<compile_context>
chip_gen: v7x
topology: tpu7x:2x2x1
jax: 0.10.0
libtpu: 0.0.40
codegen_flags: <defaults>
</compile_context>

<pallas_src>
import jax
import jax.numpy as jnp
from jax.experimental import pallas as pl
from jax.experimental.pallas import tpu as pltpu


def _round_up(n, m):
    return ((n + m - 1) // m) * m


def dhm_kernel(x_ref, w_fe_ref, b_fe_ref, w_fc_ref, b_fc_ref,
               z_ref, logits_ref):
    # ---- feature extractor (linear): (TILE_B, F_in) @ (F_in, 640) + b ----
    # bf16 MXU inputs, f32 accumulation; bias add in f32.
    h = jnp.dot(x_ref[...], w_fe_ref[...], preferred_element_type=jnp.float32)
    h = h + b_fe_ref[...]

    # ---- classification head: Linear(640, n_classes), padded to 128 lanes ----
    # padded weight/bias columns are zero, so padded logits columns are exact zeros.
    logits = jnp.dot(h.astype(w_fc_ref.dtype), w_fc_ref[...],
                     preferred_element_type=jnp.float32)
    logits = logits + b_fc_ref[...]
    logits_ref[...] = logits.astype(logits_ref.dtype)

    # ---- normalizing flow init layer: LogitTransform(alpha=0.05) ----
    alpha = jnp.float32(0.05)
    s = alpha + (1.0 - 2.0 * alpha) * h
    s = jnp.clip(s, 1e-6, 1.0 - 1e-6)          # numerical safety only (logit domain)
    # logit(s) = log(s / (1 - s)); one log + near-free approx reciprocal on the EUP.
    z = jnp.log(s * pl.reciprocal(1.0 - s, approx=True))
    z_ref[...] = z.astype(z_ref.dtype)
    # TODO(synk): the ResidualFlow's invertible resblocks (actnorm + induced-norm /
    # spectral-normed layers + LipSwish + stochastic log-det estimation) have no clean
    # standalone Pallas equivalent; only the LogitTransform init layer is implemented.


def dhm_forward(x, w_fe, b_fe, w_fc, b_fc, *, tile_b_max=256):
    """x: (B, C, H, W) float32.  Returns (z_features (B,1,32,20), logits (B,n_classes))."""
    B = x.shape[0]
    F_in = x.shape[1] * x.shape[2] * x.shape[3]
    F_hid = w_fe.shape[1]          # 640 = 1 * 32 * 20
    n_classes = w_fc.shape[1]      # 10 (CIFAR10 head)

    # -- batch tiling: TILE_B multiple of 8, batch zero-padded to a tile multiple --
    tile_b = min(tile_b_max, _round_up(B, 8))
    B_pad = _round_up(B, tile_b)
    n_pad = _round_up(n_classes, 128)          # lane-dense logits block

    x_flat = x.reshape(B, F_in)
    if B_pad != B:
        x_flat = jnp.pad(x_flat, ((0, B_pad - B), (0, 0)))

    # bf16 MXU inputs (halves weight/x HBM traffic); biases / elementwise stay f32.
    x_bf16 = x_flat.astype(jnp.bfloat16)
    w_fe_bf16 = w_fe.astype(jnp.bfloat16)
    b_fe_f32 = b_fe.reshape(1, F_hid).astype(jnp.float32)
    w_fc_p = jnp.pad(w_fc, ((0, 0), (0, n_pad - n_classes))).astype(jnp.bfloat16)
    b_fc_p = jnp.pad(b_fc.reshape(1, n_classes),
                     ((0, 0), (0, n_pad - n_classes))).astype(jnp.float32)

    grid = (B_pad // tile_b,)

    # advisory cost estimate for XLA scheduling around the custom call
    flops = 2 * B_pad * F_in * F_hid + 2 * B_pad * F_hid * n_pad
    transcendentals = 2 * B_pad * F_hid
    bytes_accessed = (x_bf16.size * 2 + w_fe_bf16.size * 2 + w_fc_p.size * 2
                      + b_fe_f32.size * 4 + b_fc_p.size * 4
                      + B_pad * F_hid * 4 + B_pad * n_pad * 4)

    z_flat, logits_pad = pl.pallas_call(
        dhm_kernel,
        out_shape=(
            jax.ShapeDtypeStruct((B_pad, F_hid), jnp.float32),
            jax.ShapeDtypeStruct((B_pad, n_pad), jnp.float32),
        ),
        grid=grid,
        in_specs=[
            pl.BlockSpec((tile_b, F_in), lambda i: (i, 0)),     # x tile, pipelined
            pl.BlockSpec((F_in, F_hid), lambda i: (0, 0)),      # w_fe, VMEM-resident
            pl.BlockSpec((1, F_hid), lambda i: (0, 0)),         # b_fe
            pl.BlockSpec((F_hid, n_pad), lambda i: (0, 0)),     # w_fc (padded)
            pl.BlockSpec((1, n_pad), lambda i: (0, 0)),         # b_fc (padded)
        ],
        out_specs=(
            pl.BlockSpec((tile_b, F_hid), lambda i: (i, 0)),    # z tile
            pl.BlockSpec((tile_b, n_pad), lambda i: (i, 0)),    # logits tile (lane-dense)
        ),
        compiler_params=pltpu.CompilerParams(
            dimension_semantics=("parallel",)),
        cost_estimate=pl.CostEstimate(
            flops=flops,
            transcendentals=transcendentals,
            bytes_accessed=bytes_accessed),
    )(x_bf16, w_fe_bf16, b_fe_f32, w_fc_p, b_fc_p)

    # strip batch padding / lane padding; reshape to the flow's input_size (B,1,32,20)
    z_features = z_flat[:B].reshape(B, 1, 32, 20)
    logits = logits_pad[:B, :n_classes]
    return z_features, logits


if __name__ == "__main__":
    key = jax.random.PRNGKey(0)
    k_x, k_fe, k_bfe, k_fc, k_bfc = jax.random.split(key, 5)

    B, C, H, W = 2, 4, 16, 16          # small synthetic input (NCHW)
    F_in = C * H * W                   # 1024
    F_hid = 640                        # 1 * 32 * 20, required by the flow reshape
    n_classes = 10                     # CIFAR10

    x = jax.random.normal(k_x, (B, C, H, W), dtype=jnp.float32)

    # deterministic synthetic parameters (no checkpoint loading)
    w_fe = jax.random.normal(k_fe, (F_in, F_hid), dtype=jnp.float32) * 0.02
    b_fe = jax.random.normal(k_bfe, (1, F_hid), dtype=jnp.float32) * 0.01
    w_fc = jax.random.normal(k_fc, (F_hid, n_classes), dtype=jnp.float32) * 0.05
    b_fc = jax.random.normal(k_bfc, (1, n_classes), dtype=jnp.float32) * 0.01

    z_features, logits = jax.jit(dhm_forward)(x, w_fe, b_fe, w_fc, b_fc)
    jax.block_until_ready((z_features, logits))

    assert z_features.shape == (B, 1, 32, 20)
    assert logits.shape == (B, n_classes)
    assert bool(jnp.all(jnp.isfinite(z_features)))
    assert bool(jnp.all(jnp.isfinite(logits)))
    print("KERNEL_OK")
</pallas_src>

<mosaic_0001>
module attributes {stable_mosaic.version = 11 : i64} {
  func.func @dhm_kernel(%arg0: i32, %arg1: memref<8x1024xbf16, #tpu.memory_space<vmem>>, %arg2: memref<1024x640xbf16, #tpu.memory_space<vmem>>, %arg3: memref<1x640xf32, #tpu.memory_space<vmem>>, %arg4: memref<640x128xbf16, #tpu.memory_space<vmem>>, %arg5: memref<1x128xf32, #tpu.memory_space<vmem>>, %arg6: memref<8x640xf32, #tpu.memory_space<vmem>>, %arg7: memref<8x128xf32, #tpu.memory_space<vmem>>) attributes {dimension_semantics = [#tpu.dimension_semantics<parallel>], iteration_bounds = array<i64: 1>, scalar_prefetch = 0 : i64, scratch_operands = 0 : i64, tpu.core_type = #tpu.core_type<tc>, window_params = [{transform_indices = @transform_0, window_bounds = array<i64: 8, 1024>}, {pipeline_mode = #tpu.pipeline_mode<synchronous>, transform_indices = @transform_1, window_bounds = array<i64: 1024, 640>}, {pipeline_mode = #tpu.pipeline_mode<synchronous>, transform_indices = @transform_2, window_bounds = array<i64: 1, 640>}, {pipeline_mode = #tpu.pipeline_mode<synchronous>, transform_indices = @transform_3, window_bounds = array<i64: 640, 128>}, {pipeline_mode = #tpu.pipeline_mode<synchronous>, transform_indices = @transform_4, window_bounds = array<i64: 1, 128>}, {transform_indices = @transform_5, window_bounds = array<i64: 8, 640>}, {transform_indices = @transform_6, window_bounds = array<i64: 8, 128>}]} {
    %c0 = arith.constant 0 : index
    %c0_0 = arith.constant 0 : index
    %0 = vector.load %arg1[%c0, %c0_0] : memref<8x1024xbf16, #tpu.memory_space<vmem>>, vector<8x1024xbf16>
    %c0_1 = arith.constant 0 : index
    %c0_2 = arith.constant 0 : index
    %1 = vector.load %arg2[%c0_1, %c0_2] : memref<1024x640xbf16, #tpu.memory_space<vmem>>, vector<1024x640xbf16>
    %cst = arith.constant dense<0.000000e+00> : vector<8x640xf32>
    %2 = tpu.matmul %0, %1, %cst {dimension_numbers = #tpu.dot_dimension_numbers<[1], [0], [0], [1], [0, 0, 1, 1], [], []>} : vector<8x1024xbf16>, vector<1024x640xbf16>, vector<8x640xf32> -> vector<8x640xf32>
    %c0_3 = arith.constant 0 : index
    %c0_4 = arith.constant 0 : index
    %3 = vector.load %arg3[%c0_3, %c0_4] : memref<1x640xf32, #tpu.memory_space<vmem>>, vector<1x640xf32>
    %4 = vector.broadcast %3 : vector<1x640xf32> to vector<8x640xf32>
    %5 = arith.addf %2, %4 : vector<8x640xf32>
    %6 = arith.truncf %5 : vector<8x640xf32> to vector<8x640xbf16>
    %c0_5 = arith.constant 0 : index
    %c0_6 = arith.constant 0 : index
    %7 = vector.load %arg4[%c0_5, %c0_6] : memref<640x128xbf16, #tpu.memory_space<vmem>>, vector<640x128xbf16>
    %cst_7 = arith.constant dense<0.000000e+00> : vector<8x128xf32>
    %8 = tpu.matmul %6, %7, %cst_7 {dimension_numbers = #tpu.dot_dimension_numbers<[1], [0], [0], [1], [0, 0, 1, 1], [], []>} : vector<8x640xbf16>, vector<640x128xbf16>, vector<8x128xf32> -> vector<8x128xf32>
    %c0_8 = arith.constant 0 : index
    %c0_9 = arith.constant 0 : index
    %9 = vector.load %arg5[%c0_8, %c0_9] : memref<1x128xf32, #tpu.memory_space<vmem>>, vector<1x128xf32>
    %10 = vector.broadcast %9 : vector<1x128xf32> to vector<8x128xf32>
    %11 = arith.addf %8, %10 : vector<8x128xf32>
    %c0_10 = arith.constant 0 : index
    %c0_11 = arith.constant 0 : index
    %12 = vector.load %arg7[%c0_10, %c0_11] : memref<8x128xf32, #tpu.memory_space<vmem>>, vector<8x128xf32>
    tpu.vector_store %arg7[%c0_10, %c0_11], %11 {strides = array<i32>} : memref<8x128xf32, #tpu.memory_space<vmem>>, vector<8x128xf32>,
    %cst_12 = arith.constant 2.000000e+00 : f32
    %cst_13 = arith.constant 5.000000e-02 : f32
    %13 = arith.mulf %cst_12, %cst_13 : f32
    %cst_14 = arith.constant 1.000000e+00 : f32
    %14 = arith.subf %cst_14, %13 : f32
    %15 = vector.broadcast %14 : f32 to vector<8x640xf32>
    %16 = arith.mulf %15, %5 : vector<8x640xf32>
    %cst_15 = arith.constant 5.000000e-02 : f32
    %17 = vector.broadcast %cst_15 : f32 to vector<8x640xf32>
    %18 = arith.addf %17, %16 : vector<8x640xf32>
    %cst_16 = arith.constant 9.99999997E-7 : f32
    %cst_17 = arith.constant 0.999998986 : f32
    %19 = vector.broadcast %cst_16 : f32 to vector<8x640xf32>
    %20 = arith.maximumf %19, %18 : vector<8x640xf32>
    %21 = vector.broadcast %cst_17 : f32 to vector<8x640xf32>
    %22 = arith.minimumf %21, %20 : vector<8x640xf32>
    %cst_18 = arith.constant 1.000000e+00 : f32
    %23 = vector.broadcast %cst_18 : f32 to vector<8x640xf32>
    %24 = arith.subf %23, %22 : vector<8x640xf32>
    %25 = tpu.reciprocal %24 {approx = true} : vector<8x640xf32> -> vector<8x640xf32>
    %26 = arith.mulf %22, %25 : vector<8x640xf32>
    %27 = math.log %26 : vector<8x640xf32>
    %c0_19 = arith.constant 0 : index
    %c0_20 = arith.constant 0 : index
    %28 = vector.load %arg6[%c0_19, %c0_20] : memref<8x640xf32, #tpu.memory_space<vmem>>, vector<8x640xf32>
    tpu.vector_store %arg6[%c0_19, %c0_20], %27 {strides = array<i32>} : memref<8x640xf32, #tpu.memory_space<vmem>>, vector<8x640xf32>,
    return
  }
  func.func @transform_0(%arg0: i32) -> (i32, i32) {
    %c0_i32 = arith.constant 0 : i32
    %c0_i32_0 = arith.constant 0 : i32
    return %arg0, %c0_i32 : i32, i32
  }
  func.func @transform_1(%arg0: i32) -> (i32, i32) {
    %c0_i32 = arith.constant 0 : i32
    %c0_i32_0 = arith.constant 0 : i32
    %c0_i32_1 = arith.constant 0 : i32
    return %c0_i32, %c0_i32_0 : i32, i32
  }
  func.func @transform_2(%arg0: i32) -> (i32, i32) {
    %c0_i32 = arith.constant 0 : i32
    %c0_i32_0 = arith.constant 0 : i32
    %c0_i32_1 = arith.constant 0 : i32
    return %c0_i32, %c0_i32_0 : i32, i32
  }
  func.func @transform_3(%arg0: i32) -> (i32, i32) {
    %c0_i32 = arith.constant 0 : i32
    %c0_i32_0 = arith.constant 0 : i32
    %c0_i32_1 = arith.constant 0 : i32
    return %c0_i32, %c0_i32_0 : i32, i32
  }
  func.func @transform_4(%arg0: i32) -> (i32, i32) {
    %c0_i32 = arith.constant 0 : i32
    %c0_i32_0 = arith.constant 0 : i32
    %c0_i32_1 = arith.constant 0 : i32
    return %c0_i32, %c0_i32_0 : i32, i32
  }
  func.func @transform_5(%arg0: i32) -> (i32, i32) {
    %c0_i32 = arith.constant 0 : i32
    %c0_i32_0 = arith.constant 0 : i32
    return %arg0, %c0_i32 : i32, i32
  }
  func.func @transform_6(%arg0: i32) -> (i32, i32) {
    %c0_i32 = arith.constant 0 : i32
    %c0_i32_0 = arith.constant 0 : i32
    return %arg0, %c0_i32 : i32, i32
  }
}

</mosaic_0001>

<bundles_post_ra>
// kernel: dhm_forward.1
= control target key start
LH: loop header
LB: loop body
LE: loop exit
PB: predicated region body
PF: predicated region fallthrough
CT: control target
= control target key end

     0   :  { %vm4206_vm0 = vmmov 0   ;;  %s5439_s1 = inlined_call_operand.vmem [shape: bf16[1024,640], index: 1, kind: input, shape index: {}]   ;;  %s5440_s0 = inlined_call_operand.vmem [shape: bf16[8,1024], index: 0, kind: input, shape index: {}]   ;;  %s5441_s3 = inlined_call_operand.vmem [shape: bf16[640,128], index: 3, kind: input, shape index: {}]   ;;  %s5442_s2 = inlined_call_operand.vmem [shape: f32[1,640], index: 2, kind: input, shape index: {}]   ;;  %s5443_s5 = inlined_call_operand.vmem [shape: f32[8,640], index: 5, kind: output, shape index: {0}]   ;;  %s5444_s4 = inlined_call_operand.vmem [shape: f32[1,128], index: 4, kind: input, shape index: {}]   ;;  %s5445_s6 = inlined_call_operand.vmem [shape: f32[8,128], index: 6, kind: output, shape index: {1}]  }
   0x1   :  { %v3689_v0 = vld [vmem:[%s5439_s1 + $0x4] ss:$20 sps:$4 sm:$0xff]   ;;  %v3691_v1 = vld [vmem:[%s5439_s1 + $0xc] ss:$20 sps:$4 sm:$0xff]   ;;  %v3694_v3 = vld [vmem:[%s5439_s1 + $0x8] ss:$20 sps:$4 sm:$0xff]  }
   0x2   :  { %2130 = vmatprep.subr.bf16.mxu0 %v3689_v0  ;;  %v3693_v2 = vld [vmem:[%s5439_s1] ss:$20 sps:$4 sm:$0xff]   ;;  %2294 = vmatprep.subr.bf16.mxu1 %v3691_v1  ;;  %v3699_v6 = vld [vmem:[%s5439_s1 + $0x28] ss:$20 sps:$4 sm:$0xff]   ;;  %v3700_v7 = vld [vmem:[%s5439_s1 + $0x30] ss:$20 sps:$4 sm:$0xff]  }
   0x3   :  { %v3695_v4 = vld [vmem:[%s5439_s1 + $0x2c] ss:$20 sps:$4 sm:$0xff]   ;;  %2131 = vmatpush1.bf16.msra.mxu0 %v3693_v2  ;;  %2295 = vmatpush1.bf16.msra.mxu1 %v3694_v3  ;;  %v3697_v5 = vld [vmem:[%s5439_s1 + $0x34] ss:$20 sps:$4 sm:$0xff]   ;;  %v3703_v9 = vld [vmem:[%s5439_s1 + $0x5c] ss:$20 sps:$4 sm:$0xff]  }
   0x4   :  { %2132 = vmatprep.subr.bf16.mxu0 %v3695_v4  ;;  %2296 = vmatprep.subr.bf16.mxu1 %v3697_v5  ;;  %v3701_v8 = vld [vmem:[%s5439_s1 + $0x54] ss:$20 sps:$4 sm:$0xff]   ;;  %v3705_v10 = vld [vmem:[%s5439_s1 + $0x50] ss:$20 sps:$4 sm:$0xff]   ;;  %v3706_v11 = vld [vmem:[%s5439_s1 + $0x58] ss:$20 sps:$4 sm:$0xff]  }
   0x5   :  { %v3707_v12 = vld [vmem:[%s5439_s1 + $0x7c] ss:$20 sps:$4 sm:$0xff]   ;;  %v3709_v13 = vld [vmem:[%s5439_s1 + $0x84] ss:$20 sps:$4 sm:$0xff]   ;;  %v3712_v15 = vld [vmem:[%s5439_s1 + $0x80] ss:$20 sps:$4 sm:$0xff]  }
   0x6   :  { %v3711_v14 = vld [vmem:[%s5439_s1 + $0x78] ss:$20 sps:$4 sm:$0xff]   ;;  %v3717_v18 = vld [vmem:[%s5439_s1 + $0xa0] ss:$20 sps:$4 sm:$0xff]   ;;  %v3718_v19 = vld [vmem:[%s5439_s1 + $0xa8] ss:$20 sps:$4 sm:$0xff]  }
   0x7   :  { %2133 = vmatpush1.bf16.msra.mxu0 %v3699_v6  ;;  %2297 = vmatpush1.bf16.msra.mxu1 %v3700_v7  ;;  %v3713_v16 = vld [vmem:[%s5439_s1 + $0xa4] ss:$20 sps:$4 sm:$0xff]   ;;  %v3715_v17 = vld [vmem:[%s5439_s1 + $0xac] ss:$20 sps:$4 sm:$0xff]   ;;  %v3721_v21 = vld [vmem:[%s5439_s1 + $0xd4] ss:$20 sps:$4 sm:$0xff]  }
   0x8   :  { %2134 = vmatprep.subr.bf16.mxu0 %v3701_v8  ;;  %2298 = vmatprep.subr.bf16.mxu1 %v3703_v9  ;;  %v3719_v20 = vld [vmem:[%s5439_s1 + $0xcc] ss:$20 sps:$4 sm:$0xff]   ;;  %v3723_v22 = vld [vmem:[%s5439_s1 + $0xc8] ss:$20 sps:$4 sm:$0xff]   ;;  %v3724_v23 = vld [vmem:[%s5439_s1 + $0xd0] ss:$20 sps:$4 sm:$0xff]  }
   0x9   :  { %v3725_v24 = vld [vmem:[%s5439_s1 + $0xf4] ss:$20 sps:$4 sm:$0xff]   ;;  %v3727_v25 = vld [vmem:[%s5439_s1 + $0xfc] ss:$20 sps:$4 sm:$0xff]   ;;  %v3730_v27 = vld [vmem:[%s5439_s1 + $0xf8] ss:$20 sps:$4 sm:$0xff]  }
   0xa   :  { %v3729_v26 = vld [vmem:[%s5439_s1 + $0xf0] ss:$20 sps:$4 sm:$0xff]   ;;  %v3735_v30 = vld [vmem:[%s5439_s1 + $0x118] ss:$20 sps:$4 sm:$0xff]   ;;  %v3736_v31 = vld [vmem:[%s5439_s1 + $0x120] ss:$20 sps:$4 sm:$0xff]  }
   0xb   :  { %2135 = vmatpush1.bf16.msra.mxu0 %v3705_v10  ;;  %2299 = vmatpush1.bf16.msra.mxu1 %v3706_v11  ;;  %v3731_v28 = vld [vmem:[%s5439_s1 + $0x11c] ss:$20 sps:$4 sm:$0xff]   ;;  %v3733_v29 = vld [vmem:[%s5439_s1 + $0x124] ss:$20 sps:$4 sm:$0xff]   ;;  %v3739_v33 = vld [vmem:[%s5439_s1 + $0x14c] ss:$20 sps:$4 sm:$0xff]  }
   0xc   :  { %2136 = vmatprep.subr.bf16.mxu0 %v3707_v12  ;;  %2300 = vmatprep.subr.bf16.mxu1 %v3709_v13  ;;  %v3737_v32 = vld [vmem:[%s5439_s1 + $0x144] ss:$20 sps:$4 sm:$0xff]   ;;  %v3741_v34 = vld [vmem:[%s5439_s1 + $0x140] ss:$20 sps:$4 sm:$0xff]   ;;  %v3742_v35 = vld [vmem:[%s5439_s1 + $0x148] ss:$20 sps:$4 sm:$0xff]  }
   0xd   :  { %v3743_v36 = vld [vmem:[%s5439_s1 + $0x16c] ss:$20 sps:$4 sm:$0xff]   ;;  %v3745_v37 = vld [vmem:[%s5439_s1 + $0x174] ss:$20 sps:$4 sm:$0xff]   ;;  %v3748_v39 = vld [vmem:[%s5439_s1 + $0x170] ss:$20 sps:$4 sm:$0xff]  }
   0xe   :  { %v3747_v38 = vld [vmem:[%s5439_s1 + $0x168] ss:$20 sps:$4 sm:$0xff]   ;;  %v3753_v42 = vld [vmem:[%s5439_s1 + $0x190] ss:$20 sps:$4 sm:$0xff]   ;;  %v3754_v43 = vld [vmem:[%s5439_s1 + $0x198] ss:$20 sps:$4 sm:$0xff]  }
   0xf   :  { %2137 = vmatpush1.bf16.msra.mxu0 %v3711_v14  ;;  %2301 = vmatpush1.bf16.msra.mxu1 %v3712_v15  ;;  %v3749_v40 = vld [vmem:[%s5439_s1 + $0x194] ss:$20 sps:$4 sm:$0xff]   ;;  %v3751_v41 = vld [vmem:[%s5439_s1 + $0x19c] ss:$20 sps:$4 sm:$0xff]   ;;  %v3757_v45 = vld [vmem:[%s5439_s1 + $0x1c4] ss:$20 sps:$4 sm:$0xff]  }
  0x10   :  { %2138 = vmatprep.subr.bf16.mxu0 %v3713_v16  ;;  %2302 = vmatprep.subr.bf16.mxu1 %v3715_v17  ;;  %v3755_v44 = vld [vmem:[%s5439_s1 + $0x1bc] ss:$20 sps:$4 sm:$0xff]   ;;  %v23_v46 = vld [vmem:[%s5440_s0] sm:$0xff]  ;;  %v3759_v47 = vld [vmem:[%s5439_s1 + $0x1b8] ss:$20 sps:$4 sm:$0xff]  }
  0x11   :  { %v4386_v48 = vcombine.high %v23_v46, %v23_v46  ;;  %v3760_v49 = vld [vmem:[%s5439_s1 + $0x1c0] ss:$20 sps:$4 sm:$0xff]   ;;  %v3761_v50 = vld [vmem:[%s5439_s1 + $0x1e4] ss:$20 sps:$4 sm:$0xff]   ;;  %v3766_v53 = vld [vmem:[%s5439_s1 + $0x1e8] ss:$20 sps:$4 sm:$0xff]   ;;  %v4450_v5 = vcombine.low %v23_v46, %v23_v46 }
  0x12   :  { %v3763_v51 = vld [vmem:[%s5439_s1 + $0x1ec] ss:$20 sps:$4 sm:$0xff]   ;;  %v3769_v55 = vld [vmem:[%s5439_s1 + $0x214] ss:$20 sps:$4 sm:$0xff]   ;;  %v3772_v57 = vld [vmem:[%s5439_s1 + $0x210] ss:$20 sps:$4 sm:$0xff]  }
  0x13   :  { %2139 = vmatpush1.bf16.msra.mxu0 %v3717_v18  ;;  %2303 = vmatpush1.bf16.msra.mxu1 %v3718_v19  ;;  %v3765_v52 = vld [vmem:[%s5439_s1 + $0x1e0] ss:$20 sps:$4 sm:$0xff]   ;;  %v3771_v56 = vld [vmem:[%s5439_s1 + $0x208] ss:$20 sps:$4 sm:$0xff]   ;;  %v3777_v60 = vld [vmem:[%s5439_s1 + $0x230] ss:$20 sps:$4 sm:$0xff]  }
  0x14   :  { %2140 = vmatprep.subr.bf16.mxu0 %v3719_v20  ;;  %2304 = vmatprep.subr.bf16.mxu1 %v3721_v21  ;;  %v3767_v54 = vld [vmem:[%s5439_s1 + $0x20c] ss:$20 sps:$4 sm:$0xff]   ;;  %v3773_v58 = vld [vmem:[%s5439_s1 + $0x234] ss:$20 sps:$4 sm:$0xff]   ;;  %v3775_v59 = vld [vmem:[%s5439_s1 + $0x23c] ss:$20 sps:$4 sm:$0xff]  }
  0x15   :  { %2162 = vmatprep.mubr.bf16.mxu0 %v4386_v48  ;;  %2326 = vmatprep.mubr.bf16.mxu1 %v4386_v48  ;;  %v3778_v61 = vld [vmem:[%s5439_s1 + $0x238] ss:$20 sps:$4 sm:$0xff]   ;;  %v3779_v62 = vld [vmem:[%s5439_s1 + $0x25c] ss:$20 sps:$4 sm:$0xff]   ;;  %v3784_v1 = vld [vmem:[%s5439_s1 + $0x260] ss:$20 sps:$4 sm:$0xff]  }
  0x16   :  { %v3781_v63 = vld [vmem:[%s5439_s1 + $0x264] ss:$20 sps:$4 sm:$0xff]   ;;  %v3791_v3 = vld [vmem:[%s5439_s1 + $0x28c] ss:$20 sps:$4 sm:$0xff]   ;;  %v3789_v6 = vld [vmem:[%s5439_s1 + $0x288] ss:$20 sps:$4 sm:$0xff]  }
  0x17   :  { %2141 = vmatpush1.bf16.msra.mxu0 %v3723_v22  ;;  %2305 = vmatpush1.bf16.msra.mxu1 %v3724_v23  ;;  %v3783_v0 = vld [vmem:[%s5439_s1 + $0x258] ss:$20 sps:$4 sm:$0xff]   ;;  %v3786_v4 = vld [vmem:[%s5439_s1 + $0x280] ss:$20 sps:$4 sm:$0xff]   ;;  %v3793_v9 = vld [vmem:[%s5439_s1 + $0x2a8] ss:$20 sps:$4 sm:$0xff]  }
  0x18   :  { %2142 = vmatprep.subr.bf16.mxu0 %v3725_v24  ;;  %2306 = vmatprep.subr.bf16.mxu1 %v3727_v25  ;;  %v3788_v2 = vld [vmem:[%s5439_s1 + $0x284] ss:$20 sps:$4 sm:$0xff]   ;;  %v3795_v7 = vld [vmem:[%s5439_s1 + $0x2ac] ss:$20 sps:$4 sm:$0xff]   ;;  %v3798_v8 = vld [vmem:[%s5439_s1 + $0x2b4] ss:$20 sps:$4 sm:$0xff]  }
  0x19   :  { %v3796_v10 = vld [vmem:[%s5439_s1 + $0x2b0] ss:$20 sps:$4 sm:$0xff]   ;;  %v3801_v11 = vld [vmem:[%s5439_s1 + $0x2d4] ss:$20 sps:$4 sm:$0xff]   ;;  %v3802_v14 = vld [vmem:[%s5439_s1 + $0x2d8] ss:$20 sps:$4 sm:$0xff]  }
  0x1a   :  { %v3804_v12 = vld [vmem:[%s5439_s1 + $0x2dc] ss:$20 sps:$4 sm:$0xff]   ;;  %v3810_v16 = vld [vmem:[%s5439_s1 + $0x304] ss:$20 sps:$4 sm:$0xff]   ;;  %v3808_v18 = vld [vmem:[%s5439_s1 + $0x300] ss:$20 sps:$4 sm:$0xff]  }
  0x1b   :  { %2143 = vmatpush1.bf16.msra.mxu0 %v3729_v26  ;;  %2307 = vmatpush1.bf16.msra.mxu1 %v3730_v27  ;;  %v3799_v13 = vld [vmem:[%s5439_s1 + $0x2d0] ss:$20 sps:$4 sm:$0xff]   ;;  %v3805_v17 = vld [vmem:[%s5439_s1 + $0x2f8] ss:$20 sps:$4 sm:$0xff]   ;;  %v3811_v21 = vld [vmem:[%s5439_s1 + $0x320] ss:$20 sps:$4 sm:$0xff]  }
  0x1c   :  { %2144 = vmatprep.subr.bf16.mxu0 %v3731_v28  ;;  %2308 = vmatprep.subr.bf16.mxu1 %v3733_v29  ;;  %v3807_v15 = vld [vmem:[%s5439_s1 + $0x2fc] ss:$20 sps:$4 sm:$0xff]   ;;  %v3813_v19 = vld [vmem:[%s5439_s1 + $0x324] ss:$20 sps:$4 sm:$0xff]   ;;  %v3816_v20 = vld [vmem:[%s5439_s1 + $0x32c] ss:$20 sps:$4 sm:$0xff]  }
  0x1d   :  { %v3814_v22 = vld [vmem:[%s5439_s1 + $0x328] ss:$20 sps:$4 sm:$0xff]   ;;  %v3819_v23 = vld [vmem:[%s5439_s1 + $0x34c] ss:$20 sps:$4 sm:$0xff]   ;;  %v3820_v26 = vld [vmem:[%s5439_s1 + $0x350] ss:$20 sps:$4 sm:$0xff]  }
  0x1e   :  { %v3822_v24 = vld [vmem:[%s5439_s1 + $0x354] ss:$20 sps:$4 sm:$0xff]   ;;  %v3828_v28 = vld [vmem:[%s5439_s1 + $0x37c] ss:$20 sps:$4 sm:$0xff]  }
  0x1f   :  { %2145 = vmatpush1.bf16.msra.mxu0 %v3735_v30  ;;  %2309 = vmatpush1.bf16.msra.mxu1 %v3736_v31  ;;  %v3817_v25 = vld [vmem:[%s5439_s1 + $0x348] ss:$20 sps:$4 sm:$0xff]   ;;  %v3823_v31 = vld [vmem:[%s5439_s1 + $0x370] ss:$20 sps:$4 sm:$0xff]  }
  0x20   :  { %2146 = vmatprep.subr.bf16.mxu0 %v3737_v32  ;;  %2310 = vmatprep.subr.bf16.mxu1 %v3739_v33  ;;  %v3825_v27 = vld [vmem:[%s5439_s1 + $0x374] ss:$20 sps:$4 sm:$0xff]   ;;  %v3826_v32 = vld [vmem:[%s5439_s1 + $0x378] ss:$20 sps:$4 sm:$0xff]   ;;  %v3831_v33 = vld [vmem:[%s5439_s1 + $0x39c] ss:$20 sps:$4 sm:$0xff]  }
  0x21   :  { %v4526_v29 = vld [vmem:[%s5440_s0 + $0x8] sm:$0xff]  ;;  %v3852_v46 = vld [vmem:[%s5439_s1 + $0x41c] ss:$20 sps:$4 sm:$0xff]  }
  0x22   :  { %v4530_v30 = vcombine.high %v4526_v29, %v4526_v29 }
  0x23   :  { %2147 = vmatpush1.bf16.msra.mxu0 %v3741_v34  ;;  %2311 = vmatpush1.bf16.msra.mxu1 %v3742_v35  ;;  %v3834_v34 = vld [vmem:[%s5439_s1 + $0x3a4] ss:$20 sps:$4 sm:$0xff]  }
  0x24   :  { %2148 = vmatprep.subr.bf16.mxu0 %v3743_v36  ;;  %2312 = vmatprep.subr.bf16.mxu1 %v3745_v37  ;;  %v3829_v35 = vld [vmem:[%s5439_s1 + $0x398] ss:$20 sps:$4 sm:$0xff]   ;;  %v3832_v36 = vld [vmem:[%s5439_s1 + $0x3a0] ss:$20 sps:$4 sm:$0xff]  }
  0x25   :  { %v3837_v37 = vld [vmem:[%s5439_s1 + $0x3c4] ss:$20 sps:$4 sm:$0xff]  }
  0x27   :  { %2149 = vmatpush1.bf16.msra.mxu0 %v3747_v38  ;;  %2313 = vmatpush1.bf16.msra.mxu1 %v3748_v39  ;;  %v3840_v38 = vld [vmem:[%s5439_s1 + $0x3cc] ss:$20 sps:$4 sm:$0xff]  }
  0x28   :  { %2150 = vmatprep.subr.bf16.mxu0 %v3749_v40  ;;  %2314 = vmatprep.subr.bf16.mxu1 %v3751_v41  ;;  %v3835_v39 = vld [vmem:[%s5439_s1 + $0x3c0] ss:$20 sps:$4 sm:$0xff]   ;;  %v3838_v40 = vld [vmem:[%s5439_s1 + $0x3c8] ss:$20 sps:$4 sm:$0xff]  }
  0x29   :  { %v3843_v41 = vld [vmem:[%s5439_s1 + $0x3ec] ss:$20 sps:$4 sm:$0xff]  }
  0x2b   :  { %2151 = vmatpush1.bf16.msra.mxu0 %v3753_v42  ;;  %2315 = vmatpush1.bf16.msra.mxu1 %v3754_v43  ;;  %v3846_v42 = vld [vmem:[%s5439_s1 + $0x3f4] ss:$20 sps:$4 sm:$0xff]  }
  0x2c   :  { %2152 = vmatprep.subr.bf16.mxu0 %v3755_v44  ;;  %2316 = vmatprep.subr.bf16.mxu1 %v3757_v45  ;;  %v3841_v43 = vld [vmem:[%s5439_s1 + $0x3e8] ss:$20 sps:$4 sm:$0xff]   ;;  %v3844_v44 = vld [vmem:[%s5439_s1 + $0x3f0] ss:$20 sps:$4 sm:$0xff]  }
  0x2d   :  { %v3849_v45 = vld [vmem:[%s5439_s1 + $0x414] ss:$20 sps:$4 sm:$0xff]  }
  0x2f   :  { %2153 = vmatpush1.bf16.msra.mxu0 %v3759_v47  ;;  %2317 = vmatpush1.bf16.msra.mxu1 %v3760_v49  ;;  %v3847_v47 = vld [vmem:[%s5439_s1 + $0x410] ss:$20 sps:$4 sm:$0xff]   ;;  %v3850_v49 = vld [vmem:[%s5439_s1 + $0x418] ss:$20 sps:$4 sm:$0xff]  }
  0x30   :  { %2154 = vmatprep.subr.bf16.mxu0 %v3761_v50  ;;  %2318 = vmatprep.subr.bf16.mxu1 %v3763_v51  ;;  %v3855_v50 = vld [vmem:[%s5439_s1 + $0x43c] ss:$20 sps:$4 sm:$0xff]   ;;  %v3858_v51 = vld [vmem:[%s5439_s1 + $0x444] ss:$20 sps:$4 sm:$0xff]  }
  0x33   :  { %2155 = vmatpush1.bf16.msra.mxu0 %v3765_v52  ;;  %2319 = vmatpush1.bf16.msra.mxu1 %v3766_v53  ;;  %v3853_v52 = vld [vmem:[%s5439_s1 + $0x438] ss:$20 sps:$4 sm:$0xff]   ;;  %v3856_v53 = vld [vmem:[%s5439_s1 + $0x440] ss:$20 sps:$4 sm:$0xff]  }
  0x34   :  { %2156 = vmatprep.subr.bf16.mxu0 %v3767_v54  ;;  %2320 = vmatprep.subr.bf16.mxu1 %v3769_v55  ;;  %v3861_v54 = vld [vmem:[%s5439_s1 + $0x464] ss:$20 sps:$4 sm:$0xff]   ;;  %v3864_v55 = vld [vmem:[%s5439_s1 + $0x46c] ss:$20 sps:$4 sm:$0xff]  }
  0x37   :  { %2157 = vmatpush1.bf16.msra.mxu0 %v3771_v56  ;;  %2321 = vmatpush1.bf16.msra.mxu1 %v3772_v57  ;;  %v3859_v56 = vld [vmem:[%s5439_s1 + $0x460] ss:$20 sps:$4 sm:$0xff]   ;;  %v3862_v57 = vld [vmem:[%s5439_s1 + $0x468] ss:$20 sps:$4 sm:$0xff]  }
  0x38   :  { %2158 = vmatprep.subr.bf16.mxu0 %v3773_v58  ;;  %2322 = vmatprep.subr.bf16.mxu1 %v3775_v59  ;;  %v3867_v58 = vld [vmem:[%s5439_s1 + $0x48c] ss:$20 sps:$4 sm:$0xff]   ;;  %v3870_v59 = vld [vmem:[%s5439_s1 + $0x494] ss:$20 sps:$4 sm:$0xff]  }
  0x3b   :  { %2159 = vmatpush1.bf16.msra.mxu0 %v3777_v60  ;;  %2323 = vmatpush1.bf16.msra.mxu1 %v3778_v61  ;;  %v3865_v60 = vld [vmem:[%s5439_s1 + $0x488] ss:$20 sps:$4 sm:$0xff]   ;;  %v3868_v61 = vld [vmem:[%s5439_s1 + $0x490] ss:$20 sps:$4 sm:$0xff]  }
  0x3c   :  { %2160 = vmatprep.subr.bf16.mxu0 %v3779_v62  ;;  %2324 = vmatprep.subr.bf16.mxu1 %v3781_v63  ;;  %v3873_v62 = vld [vmem:[%s5439_s1 + $0x4b4] ss:$20 sps:$4 sm:$0xff]   ;;  %v3876_v63 = vld [vmem:[%s5439_s1 + $0x4bc] ss:$20 sps:$4 sm:$0xff]  }
  0x3f   :  { %2161 = vmatpush1.bf16.msra.mxu0 %v3783_v0  ;;  %2325 = vmatpush1.bf16.msra.mxu1 %v3784_v1  ;;  %v3871_v0 = vld [vmem:[%s5439_s1 + $0x4b0] ss:$20 sps:$4 sm:$0xff]   ;;  %v3874_v1 = vld [vmem:[%s5439_s1 + $0x4b8] ss:$20 sps:$4 sm:$0xff]  }
  0x40   :  { %2171 = vmatprep.subr.bf16.mxu0 %v3788_v2  ;;  %2335 = vmatprep.subr.bf16.mxu1 %v3791_v3  ;;  %v3879_v2 = vld [vmem:[%s5439_s1 + $0x4dc] ss:$20 sps:$4 sm:$0xff]   ;;  %v3882_v3 = vld [vmem:[%s5439_s1 + $0x4e4] ss:$20 sps:$4 sm:$0xff]  }
  0x42   :  { %2163 = vmatmul.mubr.bf16.vlgmr.msra.gmra.mrb[0].mxu0 %v4450_v5  ;;  %2327 = vmatmul.mubr.bf16.vlgmr.msra.gmra.mrb[0].mxu1 %v4450_v5 }
  0x43   :  { %2172 = vmatpush1.bf16.msra.mxu0 %v3786_v4  ;;  %2336 = vmatpush1.bf16.msra.mxu1 %v3789_v6  ;;  %v3877_v4 = vld [vmem:[%s5439_s1 + $0x4d8] ss:$20 sps:$4 sm:$0xff]   ;;  %v3880_v6 = vld [vmem:[%s5439_s1 + $0x4e0] ss:$20 sps:$4 sm:$0xff]  }
  0x44   :  { %2173 = vmatprep.subr.bf16.mxu0 %v3795_v7  ;;  %2337 = vmatprep.subr.bf16.mxu1 %v3798_v8  ;;  %v3887_v7 = vld [vmem:[%s5439_s1 + $0x504] ss:$20 sps:$4 sm:$0xff]   ;;  %v3890_v8 = vld [vmem:[%s5439_s1 + $0x50c] ss:$20 sps:$4 sm:$0xff]  }
  0x45   :  { %2203 = vmatprep.mubr.bf16.mxu0 %v4530_v30  ;;  %2367 = vmatprep.mubr.bf16.mxu1 %v4530_v30 }
  0x47   :  { %2174 = vmatpush1.bf16.msra.mxu0 %v3793_v9  ;;  %2338 = vmatpush1.bf16.msra.mxu1 %v3796_v10  ;;  %v4656_v9 = vcombine.low %v4526_v29, %v4526_v29  ;;  %v3885_v10 = vld [vmem:[%s5439_s1 + $0x500] ss:$20 sps:$4 sm:$0xff]   ;;  %v3912_v29 = vld [vmem:[%s5439_s1 + $0x5a8] ss:$20 sps:$4 sm:$0xff]  }
  0x48   :  { %2175 = vmatprep.subr.bf16.mxu0 %v3801_v11  ;;  %2339 = vmatprep.subr.bf16.mxu1 %v3804_v12  ;;  %v3888_v11 = vld [vmem:[%s5439_s1 + $0x508] ss:$20 sps:$4 sm:$0xff]   ;;  %v3893_v12 = vld [vmem:[%s5439_s1 + $0x52c] ss:$20 sps:$4 sm:$0xff]  }
  0x4b   :  { %2176 = vmatpush1.bf16.msra.mxu0 %v3799_v13  ;;  %2340 = vmatpush1.bf16.msra.mxu1 %v3802_v14  ;;  %v4670_v13 = vld [vmem:[%s5440_s0 + $0x10] sm:$0xff] }
  0x4c   :  { %2177 = vmatprep.subr.bf16.mxu0 %v3807_v15  ;;  %2341 = vmatprep.subr.bf16.mxu1 %v3810_v16  ;;  %v3896_v14 = vld [vmem:[%s5439_s1 + $0x534] ss:$20 sps:$4 sm:$0xff]   ;;  %v4677_v15 = vcombine.high %v4670_v13, %v4670_v13 }
  0x4d   :  { %v3891_v16 = vld [vmem:[%s5439_s1 + $0x528] ss:$20 sps:$4 sm:$0xff]  }
  0x4f   :  { %2178 = vmatpush1.bf16.msra.mxu0 %v3805_v17  ;;  %2342 = vmatpush1.bf16.msra.mxu1 %v3808_v18  ;;  %v3894_v17 = vld [vmem:[%s5439_s1 + $0x530] ss:$20 sps:$4 sm:$0xff]   ;;  %v3899_v18 = vld [vmem:[%s5439_s1 + $0x554] ss:$20 sps:$4 sm:$0xff]  }
  0x50   :  { %2179 = vmatprep.subr.bf16.mxu0 %v3813_v19  ;;  %2343 = vmatprep.subr.bf16.mxu1 %v3816_v20  ;;  %v3902_v19 = vld [vmem:[%s5439_s1 + $0x55c] ss:$20 sps:$4 sm:$0xff]  }
  0x51   :  { %v3897_v20 = vld [vmem:[%s5439_s1 + $0x550] ss:$20 sps:$4 sm:$0xff]  }
  0x53   :  { %2180 = vmatpush1.bf16.msra.mxu0 %v3811_v21  ;;  %2344 = vmatpush1.bf16.msra.mxu1 %v3814_v22  ;;  %v3900_v21 = vld [vmem:[%s5439_s1 + $0x558] ss:$20 sps:$4 sm:$0xff]   ;;  %v3905_v22 = vld [vmem:[%s5439_s1 + $0x57c] ss:$20 sps:$4 sm:$0xff]  }
  0x54   :  { %2181 = vmatprep.subr.bf16.mxu0 %v3819_v23  ;;  %2345 = vmatprep.subr.bf16.mxu1 %v3822_v24  ;;  %v3908_v23 = vld [vmem:[%s5439_s1 + $0x584] ss:$20 sps:$4 sm:$0xff]  }
  0x55   :  { %v3903_v24 = vld [vmem:[%s5439_s1 + $0x578] ss:$20 sps:$4 sm:$0xff]  }
  0x57   :  { %2182 = vmatpush1.bf16.msra.mxu0 %v3817_v25  ;;  %2346 = vmatpush1.bf16.msra.mxu1 %v3820_v26  ;;  %v3906_v25 = vld [vmem:[%s5439_s1 + $0x580] ss:$20 sps:$4 sm:$0xff]   ;;  %v3911_v26 = vld [vmem:[%s5439_s1 + $0x5a4] ss:$20 sps:$4 sm:$0xff]  }
  0x58   :  { %2183 = vmatprep.subr.bf16.mxu0 %v3825_v27  ;;  %2347 = vmatprep.subr.bf16.mxu1 %v3828_v28  ;;  %v3914_v27 = vld [vmem:[%s5439_s1 + $0x5ac] ss:$20 sps:$4 sm:$0xff]  }
  0x59   :  { %v3909_v28 = vld [vmem:[%s5439_s1 + $0x5a0] ss:$20 sps:$4 sm:$0xff]  }
  0x5b   :  { %2184 = vmatpush1.bf16.msra.mxu0 %v3823_v31  ;;  %2348 = vmatpush1.bf16.msra.mxu1 %v3826_v32  ;;  %v3917_v31 = vld [vmem:[%s5439_s1 + $0x5cc] ss:$20 sps:$4 sm:$0xff]   ;;  %v3920_v32 = vld [vmem:[%s5439_s1 + $0x5d4] ss:$20 sps:$4 sm:$0xff]  }
  0x5c   :  { %2185 = vmatprep.subr.bf16.mxu0 %v3831_v33  ;;  %2349 = vmatprep.subr.bf16.mxu1 %v3834_v34  ;;  %v3915_v33 = vld [vmem:[%s5439_s1 + $0x5c8] ss:$20 sps:$4 sm:$0xff]   ;;  %v3918_v34 = vld [vmem:[%s5439_s1 + $0x5d0] ss:$20 sps:$4 sm:$0xff]  }
  0x5f   :  { %2186 = vmatpush1.bf16.msra.mxu0 %v3829_v35  ;;  %2350 = vmatpush1.bf16.msra.mxu1 %v3832_v36  ;;  %v3923_v35 = vld [vmem:[%s5439_s1 + $0x5f4] ss:$20 sps:$4 sm:$0xff]   ;;  %v3926_v36 = vld [vmem:[%s5439_s1 + $0x5fc] ss:$20 sps:$4 sm:$0xff]  }
  0x60   :  { %2187 = vmatprep.subr.bf16.mxu0 %v3837_v37  ;;  %2351 = vmatprep.subr.bf16.mxu1 %v3840_v38  ;;  %v3921_v37 = vld [vmem:[%s5439_s1 + $0x5f0] ss:$20 sps:$4 sm:$0xff]   ;;  %v3924_v38 = vld [vmem:[%s5439_s1 + $0x5f8] ss:$20 sps:$4 sm:$0xff]  }
  0x63   :  { %2188 = vmatpush1.bf16.msra.mxu0 %v3835_v39  ;;  %2352 = vmatpush1.bf16.msra.mxu1 %v3838_v40  ;;  %v3929_v39 = vld [vmem:[%s5439_s1 + $0x61c] ss:$20 sps:$4 sm:$0xff]   ;;  %v3932_v40 = vld [vmem:[%s5439_s1 + $0x624] ss:$20 sps:$4 sm:$0xff]  }
  0x64   :  { %2189 = vmatprep.subr.bf16.mxu0 %v3843_v41  ;;  %2353 = vmatprep.subr.bf16.mxu1 %v3846_v42  ;;  %v3927_v41 = vld [vmem:[%s5439_s1 + $0x618] ss:$20 sps:$4 sm:$0xff]   ;;  %v3930_v42 = vld [vmem:[%s5439_s1 + $0x620] ss:$20 sps:$4 sm:$0xff]  }
  0x67   :  { %2190 = vmatpush1.bf16.msra.mxu0 %v3841_v43  ;;  %2354 = vmatpush1.bf16.msra.mxu1 %v3844_v44  ;;  %v3935_v43 = vld [vmem:[%s5439_s1 + $0x644] ss:$20 sps:$4 sm:$0xff]   ;;  %v3938_v44 = vld [vmem:[%s5439_s1 + $0x64c] ss:$20 sps:$4 sm:$0xff]  }
  0x68   :  { %2191 = vmatprep.subr.bf16.mxu0 %v3849_v45  ;;  %2355 = vmatprep.subr.bf16.mxu1 %v3852_v46  ;;  %v3933_v45 = vld [vmem:[%s5439_s1 + $0x640] ss:$20 sps:$4 sm:$0xff]   ;;  %v3936_v46 = vld [vmem:[%s5439_s1 + $0x648] ss:$20 sps:$4 sm:$0xff]  }
  0x6b   :  { %2192 = vmatpush1.bf16.msra.mxu0 %v3847_v47  ;;  %2356 = vmatpush1.bf16.msra.mxu1 %v3850_v49  ;;  %v3941_v47 = vld [vmem:[%s5439_s1 + $0x66c] ss:$20 sps:$4 sm:$0xff]   ;;  %v3944_v49 = vld [vmem:[%s5439_s1 + $0x674] ss:$20 sps:$4 sm:$0xff]  }
  0x6c   :  { %2193 = vmatprep.subr.bf16.mxu0 %v3855_v50  ;;  %2357 = vmatprep.subr.bf16.mxu1 %v3858_v51  ;;  %v3939_v50 = vld [vmem:[%s5439_s1 + $0x668] ss:$20 sps:$4 sm:$0xff]   ;;  %v3942_v51 = vld [vmem:[%s5439_s1 + $0x670] ss:$20 sps:$4 sm:$0xff]  }
  0x6f   :  { %2194 = vmatpush1.bf16.msra.mxu0 %v3853_v52  ;;  %2358 = vmatpush1.bf16.msra.mxu1 %v3856_v53  ;;  %v3947_v52 = vld [vmem:[%s5439_s1 + $0x694] ss:$20 sps:$4 sm:$0xff]   ;;  %v3950_v53 = vld [vmem:[%s5439_s1 + $0x69c] ss:$20 sps:$4 sm:$0xff]  }
  0x70   :  { %2195 = vmatprep.subr.bf16.mxu0 %v3861_v54  ;;  %2359 = vmatprep.subr.bf16.mxu1 %v3864_v55  ;;  %v3945_v54 = vld [vmem:[%s5439_s1 + $0x690] ss:$20 sps:$4 sm:$0xff]   ;;  %v3948_v55 = vld [vmem:[%s5439_s1 + $0x698] ss:$20 sps:$4 sm:$0xff]  }
  0x73   :  { %2196 = vmatpush1.bf16.msra.mxu0 %v3859_v56  ;;  %2360 = vmatpush1.bf16.msra.mxu1 %v3862_v57  ;;  %v3953_v56 = vld [vmem:[%s5439_s1 + $0x6bc] ss:$20 sps:$4 sm:$0xff]   ;;  %v3956_v57 = vld [vmem:[%s5439_s1 + $0x6c4] ss:$20 sps:$4 sm:$0xff]  }
  0x74   :  { %2197 = vmatprep.subr.bf16.mxu0 %v3867_v58  ;;  %2361 = vmatprep.subr.bf16.mxu1 %v3870_v59  ;;  %v3951_v58 = vld [vmem:[%s5439_s1 + $0x6b8] ss:$20 sps:$4 sm:$0xff]   ;;  %v3954_v59 = vld [vmem:[%s5439_s1 + $0x6c0] ss:$20 sps:$4 sm:$0xff]  }
  0x77   :  { %2198 = vmatpush1.bf16.msra.mxu0 %v3865_v60  ;;  %2362 = vmatpush1.bf16.msra.mxu1 %v3868_v61  ;;  %v3959_v60 = vld [vmem:[%s5439_s1 + $0x6e4] ss:$20 sps:$4 sm:$0xff]   ;;  %v3962_v61 = vld [vmem:[%s5439_s1 + $0x6ec] ss:$20 sps:$4 sm:$0xff]  }
  0x78   :  { %2199 = vmatprep.subr.bf16.mxu0 %v3873_v62  ;;  %2363 = vmatprep.subr.bf16.mxu1 %v3876_v63  ;;  %v3957_v62 = vld [vmem:[%s5439_s1 + $0x6e0] ss:$20 sps:$4 sm:$0xff]   ;;  %v3960_v63 = vld [vmem:[%s5439_s1 + $0x6e8] ss:$20 sps:$4 sm:$0xff]  }
  0x7b   :  { %2200 = vmatpush1.bf16.msra.mxu0 %v3871_v0  ;;  %2364 = vmatpush1.bf16.msra.mxu1 %v3874_v1  ;;  %v3965_v0 = vld [vmem:[%s5439_s1 + $0x70c] ss:$20 sps:$4 sm:$0xff]   ;;  %v3968_v1 = vld [vmem:[%s5439_s1 + $0x714] ss:$20 sps:$4 sm:$0xff]  }
  0x7c   :  { %2201 = vmatprep.subr.bf16.mxu0 %v3879_v2  ;;  %2365 = vmatprep.subr.bf16.mxu1 %v3882_v3  ;;  %v3963_v2 = vld [vmem:[%s5439_s1 + $0x708] ss:$20 sps:$4 sm:$0xff]   ;;  %v3966_v3 = vld [vmem:[%s5439_s1 + $0x710] ss:$20 sps:$4 sm:$0xff]  }
  0x7f   :  { %2202 = vmatpush1.bf16.msra.mxu0 %v3877_v4  ;;  %2366 = vmatpush1.bf16.msra.mxu1 %v3880_v6  ;;  %v3971_v4 = vld [vmem:[%s5439_s1 + $0x734] ss:$20 sps:$4 sm:$0xff]   ;;  %v3974_v6 = vld [vmem:[%s5439_s1 + $0x73c] ss:$20 sps:$4 sm:$0xff]  }
  0x80   :  { %2212 = vmatprep.subr.bf16.mxu0 %v3887_v7  ;;  %2376 = vmatprep.subr.bf16.mxu1 %v3890_v8  ;;  %v3969_v7 = vld [vmem:[%s5439_s1 + $0x730] ss:$20 sps:$4 sm:$0xff]   ;;  %v3972_v8 = vld [vmem:[%s5439_s1 + $0x738] ss:$20 sps:$4 sm:$0xff]  }
  0x82   :  { %2204 = vmatmul.mubr.bf16.vlgmr.msra.gmra.mrb[0].mxu0 %v4656_v9  ;;  %2368 = vmatmul.mubr.bf16.vlgmr.msra.gmra.mrb[0].mxu1 %v4656_v9 }
  0x83   :  { %2213 = vmatpush1.bf16.msra.mxu0 %v3885_v10  ;;  %2377 = vmatpush1.bf16.msra.mxu1 %v3888_v11  ;;  %v3977_v10 = vld [vmem:[%s5439_s1 + $0x75c] ss:$20 sps:$4 sm:$0xff]   ;;  %v3980_v11 = vld [vmem:[%s5439_s1 + $0x764] ss:$20 sps:$4 sm:$0xff]  }
  0x84   :  { %2214 = vmatprep.subr.bf16.mxu0 %v3893_v12  ;;  %2378 = vmatprep.subr.bf16.mxu1 %v3896_v14  ;;  %v3975_v12 = vld [vmem:[%s5439_s1 + $0x758] ss:$20 sps:$4 sm:$0xff]   ;;  %v3978_v14 = vld [vmem:[%s5439_s1 + $0x760] ss:$20 sps:$4 sm:$0xff]  }
  0x85   :  { %2244 = vmatprep.mubr.bf16.mxu0 %v4677_v15  ;;  %2408 = vmatprep.mubr.bf16.mxu1 %v4677_v15 }
  0x87   :  { %2215 = vmatpush1.bf16.msra.mxu0 %v3891_v16  ;;  %2379 = vmatpush1.bf16.msra.mxu1 %v3894_v17  ;;  %v3985_v16 = vld [vmem:[%s5439_s1 + $0x784] ss:$20 sps:$4 sm:$0xff]   ;;  %v3988_v17 = vld [vmem:[%s5439_s1 + $0x78c] ss:$20 sps:$4 sm:$0xff]  }
  0x88   :  { %2216 = vmatprep.subr.bf16.mxu0 %v3899_v18  ;;  %2380 = vmatprep.subr.bf16.mxu1 %v3902_v19  ;;  %v3983_v18 = vld [vmem:[%s5439_s1 + $0x780] ss:$20 sps:$4 sm:$0xff]   ;;  %v3986_v19 = vld [vmem:[%s5439_s1 + $0x788] ss:$20 sps:$4 sm:$0xff]  }
  0x8b   :  { %2217 = vmatpush1.bf16.msra.mxu0 %v3897_v20  ;;  %2381 = vmatpush1.bf16.msra.mxu1 %v3900_v21  ;;  %v4871_v20 = vcombine.low %v4670_v13, %v4670_v13  ;;  %v4876_v21 = vld [vmem:[%s5440_s0 + $0x18] sm:$0xff] }
  0x8c   :  { %2218 = vmatprep.subr.bf16.mxu0 %v3905_v22  ;;  %2382 = vmatprep.subr.bf16.mxu1 %v3908_v23  ;;  %v3991_v22 = vld [vmem:[%s5439_s1 + $0x7ac] ss:$20 sps:$4 sm:$0xff]   ;;  %v3994_v23 = vld [vmem:[%s5439_s1 + $0x7b4] ss:$20 sps:$4 sm:$0xff]  }
  0x8d   :  { %v3989_v13 = vld [vmem:[%s5439_s1 + $0x7a8] ss:$20 sps:$4 sm:$0xff]  }
  0x8f   :  { %2219 = vmatpush1.bf16.msra.mxu0 %v3903_v24  ;;  %2383 = vmatpush1.bf16.msra.mxu1 %v3906_v25  ;;  %v4889_v24 = vcombine.high %v4876_v21, %v4876_v21  ;;  %v3992_v25 = vld [vmem:[%s5439_s1 + $0x7b0] ss:$20 sps:$4 sm:$0xff]  }
  0x90   :  { %2220 = vmatprep.subr.bf16.mxu0 %v3911_v26  ;;  %2384 = vmatprep.subr.bf16.mxu1 %v3914_v27  ;;  %v3997_v26 = vld [vmem:[%s5439_s1 + $0x7d4] ss:$20 sps:$4 sm:$0xff]   ;;  %v4000_v27 = vld [vmem:[%s5439_s1 + $0x7dc] ss:$20 sps:$4 sm:$0xff]  }
  0x93   :  { %2221 = vmatpush1.bf16.msra.mxu0 %v3909_v28  ;;  %2385 = vmatpush1.bf16.msra.mxu1 %v3912_v29  ;;  %v3995_v28 = vld [vmem:[%s5439_s1 + $0x7d0] ss:$20 sps:$4 sm:$0xff]   ;;  %v3998_v29 = vld [vmem:[%s5439_s1 + $0x7d8] ss:$20 sps:$4 sm:$0xff]  }
  0x94   :  { %2222 = vmatprep.subr.bf16.mxu0 %v3917_v31  ;;  %2386 = vmatprep.subr.bf16.mxu1 %v3920_v32  ;;  %v4003_v31 = vld [vmem:[%s5439_s1 + $0x7fc] ss:$20 sps:$4 sm:$0xff]   ;;  %v4006_v32 = vld [vmem:[%s5439_s1 + $0x804] ss:$20 sps:$4 sm:$0xff]  }
  0x97   :  { %2223 = vmatpush1.bf16.msra.mxu0 %v3915_v33  ;;  %2387 = vmatpush1.bf16.msra.mxu1 %v3918_v34  ;;  %v4001_v33 = vld [vmem:[%s5439_s1 + $0x7f8] ss:$20 sps:$4 sm:$0xff]   ;;  %v4004_v34 = vld [vmem:[%s5439_s1 + $0x800] ss:$20 sps:$4 sm:$0xff]  }
  0x98   :  { %2224 = vmatprep.subr.bf16.mxu0 %v3923_v35  ;;  %2388 = vmatprep.subr.bf16.mxu1 %v3926_v36  ;;  %v4009_v35 = vld [vmem:[%s5439_s1 + $0x824] ss:$20 sps:$4 sm:$0xff]   ;;  %v4012_v36 = vld [vmem:[%s5439_s1 + $0x82c] ss:$20 sps:$4 sm:$0xff]  }
  0x9b   :  { %2225 = vmatpush1.bf16.msra.mxu0 %v3921_v37  ;;  %2389 = vmatpush1.bf16.msra.mxu1 %v3924_v38  ;;  %v4007_v37 = vld [vmem:[%s5439_s1 + $0x820] ss:$20 sps:$4 sm:$0xff]   ;;  %v4010_v38 = vld [vmem:[%s5439_s1 + $0x828] ss:$20 sps:$4 sm:$0xff]  }
  0x9c   :  { %2226 = vmatprep.subr.bf16.mxu0 %v3929_v39  ;;  %2390 = vmatprep.subr.bf16.mxu1 %v3932_v40  ;;  %v4015_v39 = vld [vmem:[%s5439_s1 + $0x84c] ss:$20 sps:$4 sm:$0xff]   ;;  %v4018_v40 = vld [vmem:[%s5439_s1 + $0x854] ss:$20 sps:$4 sm:$0xff]  }
  0x9f   :  { %2227 = vmatpush1.bf16.msra.mxu0 %v3927_v41  ;;  %2391 = vmatpush1.bf16.msra.mxu1 %v3930_v42  ;;  %v4013_v41 = vld [vmem:[%s5439_s1 + $0x848] ss:$20 sps:$4 sm:$0xff]   ;;  %v4016_v42 = vld [vmem:[%s5439_s1 + $0x850] ss:$20 sps:$4 sm:$0xff]  }
  0xa0   :  { %2228 = vmatprep.subr.bf16.mxu0 %v3935_v43  ;;  %2392 = vmatprep.subr.bf16.mxu1 %v3938_v44  ;;  %v4021_v43 = vld [vmem:[%s5439_s1 + $0x874] ss:$20 sps:$4 sm:$0xff]   ;;  %v4024_v44 = vld [vmem:[%s5439_s1 + $0x87c] ss:$20 sps:$4 sm:$0xff]  }
  0xa3   :  { %2229 = vmatpush1.bf16.msra.mxu0 %v3933_v45  ;;  %2393 = vmatpush1.bf16.msra.mxu1 %v3936_v46  ;;  %v4019_v45 = vld [vmem:[%s5439_s1 + $0x870] ss:$20 sps:$4 sm:$0xff]   ;;  %v4022_v46 = vld [vmem:[%s5439_s1 + $0x878] ss:$20 sps:$4 sm:$0xff]  }
  0xa4   :  { %2230 = vmatprep.subr.bf16.mxu0 %v3941_v47  ;;  %2394 = vmatprep.subr.bf16.mxu1 %v3944_v49  ;;  %v4027_v47 = vld [vmem:[%s5439_s1 + $0x89c] ss:$20 sps:$4 sm:$0xff]   ;;  %v4030_v49 = vld [vmem:[%s5439_s1 + $0x8a4] ss:$20 sps:$4 sm:$0xff]  }
  0xa7   :  { %2231 = vmatpush1.bf16.msra.mxu0 %v3939_v50  ;;  %2395 = vmatpush1.bf16.msra.mxu1 %v3942_v51  ;;  %v4025_v50 = vld [vmem:[%s5439_s1 + $0x898] ss:$20 sps:$4 sm:$0xff]   ;;  %v4028_v51 = vld [vmem:[%s5439_s1 + $0x8a0] ss:$20 sps:$4 sm:$0xff]  }
  0xa8   :  { %2232 = vmatprep.subr.bf16.mxu0 %v3947_v52  ;;  %2396 = vmatprep.subr.bf16.mxu1 %v3950_v53  ;;  %v4033_v52 = vld [vmem:[%s5439_s1 + $0x8c4] ss:$20 sps:$4 sm:$0xff]   ;;  %v4036_v53 = vld [vmem:[%s5439_s1 + $0x8cc] ss:$20 sps:$4 sm:$0xff]  }
  0xab   :  { %2233 = vmatpush1.bf16.msra.mxu0 %v3945_v54  ;;  %2397 = vmatpush1.bf16.msra.mxu1 %v3948_v55  ;;  %v4031_v54 = vld [vmem:[%s5439_s1 + $0x8c0] ss:$20 sps:$4 sm:$0xff]   ;;  %v4034_v55 = vld [vmem:[%s5439_s1 + $0x8c8] ss:$20 sps:$4 sm:$0xff]  }
  0xac   :  { %2234 = vmatprep.subr.bf16.mxu0 %v3953_v56  ;;  %2398 = vmatprep.subr.bf16.mxu1 %v3956_v57  ;;  %v4039_v56 = vld [vmem:[%s5439_s1 + $0x8ec] ss:$20 sps:$4 sm:$0xff]   ;;  %v4042_v57 = vld [vmem:[%s5439_s1 + $0x8f4] ss:$20 sps:$4 sm:$0xff]  }
  0xaf   :  { %2235 = vmatpush1.bf16.msra.mxu0 %v3951_v58  ;;  %2399 = vmatpush1.bf16.msra.mxu1 %v3954_v59  ;;  %v4037_v58 = vld [vmem:[%s5439_s1 + $0x8e8] ss:$20 sps:$4 sm:$0xff]   ;;  %v4040_v59 = vld [vmem:[%s5439_s1 + $0x8f0] ss:$20 sps:$4 sm:$0xff]  }
  0xb0   :  { %2236 = vmatprep.subr.bf16.mxu0 %v3959_v60  ;;  %2400 = vmatprep.subr.bf16.mxu1 %v3962_v61  ;;  %v4045_v60 = vld [vmem:[%s5439_s1 + $0x914] ss:$20 sps:$4 sm:$0xff]   ;;  %v4048_v61 = vld [vmem:[%s5439_s1 + $0x91c] ss:$20 sps:$4 sm:$0xff]  }
  0xb3   :  { %2237 = vmatpush1.bf16.msra.mxu0 %v3957_v62  ;;  %2401 = vmatpush1.bf16.msra.mxu1 %v3960_v63  ;;  %v4043_v62 = vld [vmem:[%s5439_s1 + $0x910] ss:$20 sps:$4 sm:$0xff]   ;;  %v4046_v63 = vld [vmem:[%s5439_s1 + $0x918] ss:$20 sps:$4 sm:$0xff]  }
  0xb4   :  { %2238 = vmatprep.subr.bf16.mxu0 %v3965_v0  ;;  %2402 = vmatprep.subr.bf16.mxu1 %v3968_v1  ;;  %v4051_v0 = vld [vmem:[%s5439_s1 + $0x93c] ss:$20 sps:$4 sm:$0xff]   ;;  %v4054_v1 = vld [vmem:[%s5439_s1 + $0x944] ss:$20 sps:$4 sm:$0xff]  }
  0xb7   :  { %2239 = vmatpush1.bf16.msra.mxu0 %v3963_v2  ;;  %2403 = vmatpush1.bf16.msra.mxu1 %v3966_v3  ;;  %v4049_v2 = vld [vmem:[%s5439_s1 + $0x938] ss:$20 sps:$4 sm:$0xff]   ;;  %v4052_v3 = vld [vmem:[%s5439_s1 + $0x940] ss:$20 sps:$4 sm:$0xff]  }
  0xb8   :  { %2240 = vmatprep.subr.bf16.mxu0 %v3971_v4  ;;  %2404 = vmatprep.subr.bf16.mxu1 %v3974_v6  ;;  %v4057_v4 = vld [vmem:[%s5439_s1 + $0x964] ss:$20 sps:$4 sm:$0xff]   ;;  %v4060_v6 = vld [vmem:[%s5439_s1 + $0x96c] ss:$20 sps:$4 sm:$0xff]  }
  0xbb   :  { %2241 = vmatpush1.bf16.msra.mxu0 %v3969_v7  ;;  %2405 = vmatpush1.bf16.msra.mxu1 %v3972_v8  ;;  %v4055_v7 = vld [vmem:[%s5439_s1 + $0x960] ss:$20 sps:$4 sm:$0xff]   ;;  %v4058_v8 = vld [vmem:[%s5439_s1 + $0x968] ss:$20 sps:$4 sm:$0xff]  }
  0xbc   :  { %2242 = vmatprep.subr.bf16.mxu0 %v3977_v10  ;;  %2406 = vmatprep.subr.bf16.mxu1 %v3980_v11  ;;  %v4063_v10 = vld [vmem:[%s5439_s1 + $0x98c] ss:$20 sps:$4 sm:$0xff]   ;;  %v4066_v11 = vld [vmem:[%s5439_s1 + $0x994] ss:$20 sps:$4 sm:$0xff]  }
  0xbf   :  { %2243 = vmatpush1.bf16.msra.mxu0 %v3975_v12  ;;  %2407 = vmatpush1.bf16.msra.mxu1 %v3978_v14  ;;  %v4061_v12 = vld [vmem:[%s5439_s1 + $0x988] ss:$20 sps:$4 sm:$0xff]   ;;  %v4064_v14 = vld [vmem:[%s5439_s1 + $0x990] ss:$20 sps:$4 sm:$0xff]  }
  0xc0   :  { %2253 = vmatprep.subr.bf16.mxu0 %v3985_v16  ;;  %2417 = vmatprep.subr.bf16.mxu1 %v3988_v17  ;;  %v4069_v16 = vld [vmem:[%s5439_s1 + $0x9b4] ss:$20 sps:$4 sm:$0xff]   ;;  %v4072_v17 = vld [vmem:[%s5439_s1 + $0x9bc] ss:$20 sps:$4 sm:$0xff]  }
  0xc2   :  { %2245 = vmatmul.mubr.bf16.vlgmr.msra.gmra.mrb[0].mxu0 %v4871_v20  ;;  %2409 = vmatmul.mubr.bf16.vlgmr.msra.gmra.mrb[0].mxu1 %v4871_v20 }
  0xc3   :  { %2254 = vmatpush1.bf16.msra.mxu0 %v3983_v18  ;;  %2418 = vmatpush1.bf16.msra.mxu1 %v3986_v19  ;;  %v4067_v18 = vld [vmem:[%s5439_s1 + $0x9b0] ss:$20 sps:$4 sm:$0xff]   ;;  %v4070_v19 = vld [vmem:[%s5439_s1 + $0x9b8] ss:$20 sps:$4 sm:$0xff]  }
  0xc4   :  { %2255 = vmatprep.subr.bf16.mxu0 %v3991_v22  ;;  %2419 = vmatprep.subr.bf16.mxu1 %v3994_v23  ;;  %v4075_v22 = vld [vmem:[%s5439_s1 + $0x9dc] ss:$20 sps:$4 sm:$0xff]   ;;  %v4078_v23 = vld [vmem:[%s5439_s1 + $0x9e4] ss:$20 sps:$4 sm:$0xff]  }
  0xc5   :  { %2285 = vmatprep.mubr.bf16.mxu0 %v4889_v24  ;;  %2449 = vmatprep.mubr.bf16.mxu1 %v4889_v24 }
  0xc7   :  { %2256 = vmatpush1.bf16.msra.mxu0 %v3989_v13  ;;  %2420 = vmatpush1.bf16.msra.mxu1 %v3992_v25  ;;  %v4073_v13 = vld [vmem:[%s5439_s1 + $0x9d8] ss:$20 sps:$4 sm:$0xff]   ;;  %v4076_v25 = vld [vmem:[%s5439_s1 + $0x9e0] ss:$20 sps:$4 sm:$0xff]  }
  0xc8   :  { %2257 = vmatprep.subr.bf16.mxu0 %v3997_v26  ;;  %2421 = vmatprep.subr.bf16.mxu1 %v4000_v27  ;;  %v4081_v26 = vld [vmem:[%s5439_s1 + $0x150] ss:$20 sps:$4 sm:$0xff]  }
  0xc9   :  { %v4082_v27 = vld [vmem:[%s5439_s1 + $0x3d0] ss:$20 sps:$4 sm:$0xff]  }
  0xcb   :  { %2258 = vmatpush1.bf16.msra.mxu0 %v3995_v28  ;;  %2422 = vmatpush1.bf16.msra.mxu1 %v3998_v29  ;;  %v4083_v28 = vld [vmem:[%s5439_s1 + $0x10] ss:$20 sps:$4 sm:$0xff]   ;;  %v5077_v29 = vcombine.low %v4876_v21, %v4876_v21  ;;  %v4087_v21 = vld [vmem:[%s5439_s1 + $0x38] ss:$20 sps:$4 sm:$0xff]  }
  0xcc   :  { %2259 = vmatprep.subr.bf16.mxu0 %v4003_v31  ;;  %2423 = vmatprep.subr.bf16.mxu1 %v4006_v32  ;;  %v4084_v31 = vld [vmem:[%s5439_s1 + $0x290] ss:$20 sps:$4 sm:$0xff]   ;;  %v4085_v32 = vld [vmem:[%s5439_s1 + $0x178] ss:$20 sps:$4 sm:$0xff]  }
  0xcf   :  { %2260 = vmatpush1.bf16.msra.mxu0 %v4001_v33  ;;  %2424 = vmatpush1.bf16.msra.mxu1 %v4004_v34  ;;  %v4086_v33 = vld [vmem:[%s5439_s1 + $0x3f8] ss:$20 sps:$4 sm:$0xff]  }
  0xd0   :  { %2261 = vmatprep.subr.bf16.mxu0 %v4009_v35  ;;  %2425 = vmatprep.subr.bf16.mxu1 %v4012_v36  ;;  %v4088_v34 = vld [vmem:[%s5439_s1 + $0x2b8] ss:$20 sps:$4 sm:$0xff]   ;;  %v4089_v35 = vld [vmem:[%s5439_s1 + $0x1a0] ss:$20 sps:$4 sm:$0xff]  }
  0xd1   :  { %v4090_v36 = vld [vmem:[%s5439_s1 + $0x420] ss:$20 sps:$4 sm:$0xff]  }
  0xd3   :  { %2262 = vmatpush1.bf16.msra.mxu0 %v4007_v37  ;;  %2426 = vmatpush1.bf16.msra.mxu1 %v4010_v38  ;;  %v4091_v37 = vld [vmem:[%s5439_s1 + $0x60] ss:$20 sps:$4 sm:$0xff]  }
  0xd4   :  { %2263 = vmatprep.subr.bf16.mxu0 %v4015_v39  ;;  %2427 = vmatprep.subr.bf16.mxu1 %v4018_v40  ;;  %v4092_v38 = vld [vmem:[%s5439_s1 + $0x2e0] ss:$20 sps:$4 sm:$0xff]   ;;  %v4093_v39 = vld [vmem:[%s5439_s1 + $0x1c8] ss:$20 sps:$4 sm:$0xff]  }
  0xd5   :  { %v4094_v40 = vld [vmem:[%s5439_s1 + $0x448] ss:$20 sps:$4 sm:$0xff]  }
  0xd7   :  { %2264 = vmatpush1.bf16.msra.mxu0 %v4013_v41  ;;  %2428 = vmatpush1.bf16.msra.mxu1 %v4016_v42  ;;  %v4095_v41 = vld [vmem:[%s5439_s1 + $0x88] ss:$20 sps:$4 sm:$0xff]   ;;  %v4098_v42 = vld [vmem:[%s5439_s1 + $0x470] ss:$20 sps:$4 sm:$0xff]  }
  0xd8   :  { %2265 = vmatprep.subr.bf16.mxu0 %v4021_v43  ;;  %2429 = vmatprep.subr.bf16.mxu1 %v4024_v44  ;;  %v4099_v43 = vld [vmem:[%s5439_s1 + $0xb0] ss:$20 sps:$4 sm:$0xff]  }
  0xd9   :  { %v4100_v44 = vld [vmem:[%s5439_s1 + $0x330] ss:$20 sps:$4 sm:$0xff]  }
  0xdb   :  { %2266 = vmatpush1.bf16.msra.mxu0 %v4019_v45  ;;  %2430 = vmatpush1.bf16.msra.mxu1 %v4022_v46  ;;  %v4101_v45 = vld [vmem:[%s5439_s1 + $0x218] ss:$20 sps:$4 sm:$0xff]  }
  0xdc   :  { %2267 = vmatprep.subr.bf16.mxu0 %v4027_v47  ;;  %2431 = vmatprep.subr.bf16.mxu1 %v4030_v49  ;;  %v4102_v46 = vld [vmem:[%s5439_s1 + $0x498] ss:$20 sps:$4 sm:$0xff]  }
  0xdd   :  { %v4103_v47 = vld [vmem:[%s5439_s1 + $0xd8] ss:$20 sps:$4 sm:$0xff]  }
  0xde   :  { %v4104_v49 = vld [vmem:[%s5439_s1 + $0x358] ss:$20 sps:$4 sm:$0xff]  }
  0xdf   :  { %2268 = vmatpush1.bf16.msra.mxu0 %v4025_v50  ;;  %2432 = vmatpush1.bf16.msra.mxu1 %v4028_v51  ;;  %v4105_v50 = vld [vmem:[%s5439_s1 + $0x240] ss:$20 sps:$4 sm:$0xff]  }
  0xe0   :  { %2269 = vmatprep.subr.bf16.mxu0 %v4033_v52  ;;  %2433 = vmatprep.subr.bf16.mxu1 %v4036_v53  ;;  %v4106_v51 = vld [vmem:[%s5439_s1 + $0x4c0] ss:$20 sps:$4 sm:$0xff]  }
  0xe1   :  { %v4107_v52 = vld [vmem:[%s5439_s1 + $0x100] ss:$20 sps:$4 sm:$0xff]  }
  0xe2   :  { %v4108_v53 = vld [vmem:[%s5439_s1 + $0x380] ss:$20 sps:$4 sm:$0xff]  }
  0xe3   :  { %2270 = vmatpush1.bf16.msra.mxu0 %v4031_v54  ;;  %2434 = vmatpush1.bf16.msra.mxu1 %v4034_v55  ;;  %v4109_v54 = vld [vmem:[%s5439_s1 + $0x268] ss:$20 sps:$4 sm:$0xff]  }
  0xe4   :  { %2271 = vmatprep.subr.bf16.mxu0 %v4039_v56  ;;  %2435 = vmatprep.subr.bf16.mxu1 %v4042_v57  ;;  %v4110_v55 = vld [vmem:[%s5439_s1 + $0x4e8] ss:$20 sps:$4 sm:$0xff]  }
  0xe5   :  { %v4111_v56 = vld [vmem:[%s5439_s1 + $0x128] ss:$20 sps:$4 sm:$0xff]  }
  0xe6   :  { %v4112_v57 = vld [vmem:[%s5439_s1 + $0x3a8] ss:$20 sps:$4 sm:$0xff]  }
  0xe7   :  { %2272 = vmatpush1.bf16.msra.mxu0 %v4037_v58  ;;  %2436 = vmatpush1.bf16.msra.mxu1 %v4040_v59  ;;  %v4113_v58 = vld [vmem:[%s5439_s1 + $0x650] ss:$20 sps:$4 sm:$0xff]  }
  0xe8   :  { %2273 = vmatprep.subr.bf16.mxu0 %v4045_v60  ;;  %2437 = vmatprep.subr.bf16.mxu1 %v4048_v61  ;;  %v4114_v59 = vld [vmem:[%s5439_s1 + $0x8d0] ss:$20 sps:$4 sm:$0xff]  }
  0xe9   :  { %v4115_v60 = vld [vmem:[%s5439_s1 + $0x510] ss:$20 sps:$4 sm:$0xff]  }
  0xea   :  { %v4116_v61 = vld [vmem:[%s5439_s1 + $0x790] ss:$20 sps:$4 sm:$0xff]  }
  0xeb   :  { %2274 = vmatpush1.bf16.msra.mxu0 %v4043_v62  ;;  %2438 = vmatpush1.bf16.msra.mxu1 %v4046_v63  ;;  %v4117_v62 = vld [vmem:[%s5439_s1 + $0x678] ss:$20 sps:$4 sm:$0xff]  }
  0xec   :  { %2275 = vmatprep.subr.bf16.mxu0 %v4051_v0  ;;  %2439 = vmatprep.subr.bf16.mxu1 %v4054_v1  ;;  %v4118_v63 = vld [vmem:[%s5439_s1 + $0x8f8] ss:$20 sps:$4 sm:$0xff]  }
  0xed   :  { %v4119_v0 = vld [vmem:[%s5439_s1 + $0x538] ss:$20 sps:$4 sm:$0xff]  }
  0xee   :  { %v4120_v1 = vld [vmem:[%s5439_s1 + $0x7b8] ss:$20 sps:$4 sm:$0xff]  }
  0xef   :  { %2276 = vmatpush1.bf16.msra.mxu0 %v4049_v2  ;;  %2440 = vmatpush1.bf16.msra.mxu1 %v4052_v3  ;;  %v4121_v2 = vld [vmem:[%s5439_s1 + $0x6a0] ss:$20 sps:$4 sm:$0xff]  }
  0xf0   :  { %2277 = vmatprep.subr.bf16.mxu0 %v4057_v4  ;;  %2441 = vmatprep.subr.bf16.mxu1 %v4060_v6  ;;  %v4124_v3 = vld [vmem:[%s5439_s1 + $0x7e0] ss:$20 sps:$4 sm:$0xff]   ;;  %v4125_v4 = vld [vmem:[%s5439_s1 + $0x6c8] ss:$20 sps:$4 sm:$0xff]  }
  0xf1   :  { %v4128_v6 = vld [vmem:[%s5439_s1 + $0x808] ss:$20 sps:$4 sm:$0xff]  }
  0xf3   :  { %2278 = vmatpush1.bf16.msra.mxu0 %v4055_v7  ;;  %2442 = vmatpush1.bf16.msra.mxu1 %v4058_v8  ;;  %v4129_v7 = vld [vmem:[%s5439_s1 + $0x6f0] ss:$20 sps:$4 sm:$0xff]  }
  0xf4   :  { %2279 = vmatprep.subr.bf16.mxu0 %v4063_v10  ;;  %2443 = vmatprep.subr.bf16.mxu1 %v4066_v11  ;;  %v4130_v8 = vld [vmem:[%s5439_s1 + $0x970] ss:$20 sps:$4 sm:$0xff]  }
  0xf5   :  { %v4131_v10 = vld [vmem:[%s5439_s1 + $0x5b0] ss:$20 sps:$4 sm:$0xff]  }
  0xf6   :  { %v4132_v11 = vld [vmem:[%s5439_s1 + $0x830] ss:$20 sps:$4 sm:$0xff]  }
  0xf7   :  { %2280 = vmatpush1.bf16.msra.mxu0 %v4061_v12  ;;  %2444 = vmatpush1.bf16.msra.mxu1 %v4064_v14  ;;  %v4133_v12 = vld [vmem:[%s5439_s1 + $0x718] ss:$20 sps:$4 sm:$0xff]  }
  0xf8   :  { %2281 = vmatprep.subr.bf16.mxu0 %v4069_v16  ;;  %2445 = vmatprep.subr.bf16.mxu1 %v4072_v17  ;;  %v4134_v14 = vld [vmem:[%s5439_s1 + $0x998] ss:$20 sps:$4 sm:$0xff]  }
  0xf9   :  { %v4135_v16 = vld [vmem:[%s5439_s1 + $0x5d8] ss:$20 sps:$4 sm:$0xff]  }
  0xfa   :  { %v4136_v17 = vld [vmem:[%s5439_s1 + $0x858] ss:$20 sps:$4 sm:$0xff]  }
  0xfb   :  { %2282 = vmatpush1.bf16.msra.mxu0 %v4067_v18  ;;  %2446 = vmatpush1.bf16.msra.mxu1 %v4070_v19  ;;  %v4137_v18 = vld [vmem:[%s5439_s1 + $0x740] ss:$20 sps:$4 sm:$0xff]  }
  0xfc   :  { %2283 = vmatprep.subr.bf16.mxu0 %v4075_v22  ;;  %2447 = vmatprep.subr.bf16.mxu1 %v4078_v23  ;;  %v4138_v19 = vld [vmem:[%s5439_s1 + $0x9c0] ss:$20 sps:$4 sm:$0xff]  }
  0xfd   :  { %v4139_v22 = vld [vmem:[%s5439_s1 + $0x600] ss:$20 sps:$4 sm:$0xff]  }
  0xfe   :  { %v4140_v23 = vld [vmem:[%s5439_s1 + $0x880] ss:$20 sps:$4 sm:$0xff]  }
  0xff   :  { %2284 = vmatpush1.bf16.msra.mxu0 %v4073_v13  ;;  %2448 = vmatpush1.bf16.msra.mxu1 %v4076_v25  ;;  %v4141_v13 = vld [vmem:[%s5439_s1 + $0x768] ss:$20 sps:$4 sm:$0xff]  }
 0x100   :  { %3498 = vmatprep.subr.bf16.mxu0 %v4081_v26  ;;  %3520 = vmatprep.subr.bf16.mxu1 %v4082_v27  ;;  %v4142_v25 = vld [vmem:[%s5439_s1 + $0x9e8] ss:$20 sps:$4 sm:$0xff]  }
 0x101   :  { %v4143_v26 = vld [vmem:[%s5439_s1 + $0x628] ss:$20 sps:$4 sm:$0xff]  }
 0x102   :  { %2286 = vmatmul.mubr.bf16.vlgmr.msra.gmra.mrb[0].mxu0 %v5077_v29  ;;  %2450 = vmatmul.mubr.bf16.vlgmr.msra.gmra.mrb[0].mxu1 %v5077_v29  ;;  %v4144_v27 = vld [vmem:[%s5439_s1 + $0x8a8] ss:$20 sps:$4 sm:$0xff]  }
 0x103   :  { %3499 = vmatpush3.bf16.msra.mxu0 %v4083_v28  ;;  %3521 = vmatpush3.bf16.msra.mxu1 %v4084_v31  ;;  %v4145_v28 = vld [vmem:[%s5441_s3 + $0x40] sm:$0xff]  }
 0x104   :  { %3500 = vmatprep.subr.bf16.mxu0 %v4085_v32  ;;  %3522 = vmatprep.subr.bf16.mxu1 %v4086_v33  ;;  %v4146_v31 = vld [vmem:[%s5441_s3 + $0xc0] sm:$0xff]  }
 0x105   :  { %2490 = vmatprep.mubr.bf16.mxu0 %v4386_v48  ;;  %2530 = vmatprep.mubr.bf16.mxu1 %v4530_v30  ;;  %v4096_v48 = vld [vmem:[%s5439_s1 + $0x308] ss:$20 sps:$4 sm:$0xff]   ;;  %v4097_v30 = vld [vmem:[%s5439_s1 + $0x1f0] ss:$20 sps:$4 sm:$0xff]  }
 0x106   :  { %v4147_v32 = vld [vmem:[%s5441_s3] sm:$0xff]  }
 0x107   :  { %3501 = vmatpush3.bf16.msra.mxu0 %v4087_v21  ;;  %3523 = vmatpush3.bf16.msra.mxu1 %v4088_v34  ;;  %v4148_v33 = vld [vmem:[%s5441_s3 + $0x80] sm:$0xff]   ;;  %v4149_v21 = vld [vmem:[%s5441_s3 + $0x48] sm:$0xff]  }
 0x108   :  { %3502 = vmatprep.subr.bf16.mxu0 %v4089_v35  ;;  %3524 = vmatprep.subr.bf16.mxu1 %v4090_v36  ;;  %v4150_v34 = vld [vmem:[%s5441_s3 + $0xc8] sm:$0xff]  }
 0x109   :  { %v4151_v35 = vld [vmem:[%s5441_s3 + $0x8] sm:$0xff]  }
 0x10a   :  { %v4152_v36 = vld [vmem:[%s5441_s3 + $0x88] sm:$0xff]  }
 0x10b   :  { %3503 = vmatpush3.bf16.msra.mxu0 %v4091_v37  ;;  %3525 = vmatpush3.bf16.msra.mxu1 %v4092_v38  ;;  %v4153_v37 = vld [vmem:[%s5441_s3 + $0x50] sm:$0xff]  }
 0x10c   :  { %3504 = vmatprep.subr.bf16.mxu0 %v4093_v39  ;;  %3526 = vmatprep.subr.bf16.mxu1 %v4094_v40  ;;  %v4156_v38 = vld [vmem:[%s5441_s3 + $0x90] sm:$0xff]   ;;  %v4157_v39 = vld [vmem:[%s5441_s3 + $0x58] sm:$0xff]  }
 0x10d   :  { %v4158_v40 = vld [vmem:[%s5441_s3 + $0xd8] sm:$0xff]  }
 0x10f   :  { %3505 = vmatpush3.bf16.msra.mxu0 %v4095_v41  ;;  %3527 = vmatpush3.bf16.msra.mxu1 %v4096_v48  ;;  %v4159_v41 = vld [vmem:[%s5441_s3 + $0x18] sm:$0xff]  }
 0x110   :  { %3506 = vmatprep.subr.bf16.mxu0 %v4097_v30  ;;  %3528 = vmatprep.subr.bf16.mxu1 %v4098_v42  ;;  %v4160_v48 = vld [vmem:[%s5441_s3 + $0x98] sm:$0xff]   ;;  %v4161_v30 = vld [vmem:[%s5441_s3 + $0x60] sm:$0xff]  }
 0x111   :  { %v4162_v42 = vld [vmem:[%s5441_s3 + $0xe0] sm:$0xff]  }
 0x113   :  { %3507 = vmatpush3.bf16.msra.mxu0 %v4099_v43  ;;  %3529 = vmatpush3.bf16.msra.mxu1 %v4100_v44  ;;  %v4163_v43 = vld [vmem:[%s5441_s3 + $0x20] sm:$0xff]  }
 0x114   :  { %3508 = vmatprep.subr.bf16.mxu0 %v4101_v45  ;;  %3530 = vmatprep.subr.bf16.mxu1 %v4102_v46  ;;  %v4164_v44 = vld [vmem:[%s5441_s3 + $0xa0] sm:$0xff]   ;;  %v4165_v45 = vld [vmem:[%s5441_s3 + $0x68] sm:$0xff]  }
 0x115   :  { %v4166_v46 = vld [vmem:[%s5441_s3 + $0xe8] sm:$0xff]  }
 0x117   :  { %3509 = vmatpush3.bf16.msra.mxu0 %v4103_v47  ;;  %3531 = vmatpush3.bf16.msra.mxu1 %v4104_v49  ;;  %v4167_v47 = vld [vmem:[%s5441_s3 + $0x28] sm:$0xff]  }
 0x118   :  { %3510 = vmatprep.subr.bf16.mxu0 %v4105_v50  ;;  %3532 = vmatprep.subr.bf16.mxu1 %v4106_v51  ;;  %v4168_v49 = vld [vmem:[%s5441_s3 + $0xa8] sm:$0xff]   ;;  %v4169_v50 = vld [vmem:[%s5441_s3 + $0x70] sm:$0xff]  }
 0x119   :  { %v4170_v51 = vld [vmem:[%s5441_s3 + $0xf0] sm:$0xff]  }
 0x11b   :  { %3511 = vmatpush3.bf16.msra.mxu0 %v4107_v52  ;;  %3533 = vmatpush3.bf16.msra.mxu1 %v4108_v53  ;;  %v4171_v52 = vld [vmem:[%s5441_s3 + $0x30] sm:$0xff]  }
 0x11c   :  { %3512 = vmatprep.subr.bf16.mxu0 %v4109_v54  ;;  %3534 = vmatprep.subr.bf16.mxu1 %v4110_v55  ;;  %v4172_v53 = vld [vmem:[%s5441_s3 + $0xb0] sm:$0xff]   ;;  %v4173_v54 = vld [vmem:[%s5441_s3 + $0x78] sm:$0xff]  }
 0x11d   :  { %v4174_v55 = vld [vmem:[%s5441_s3 + $0xf8] sm:$0xff]  }
 0x11f   :  { %3513 = vmatpush3.bf16.msra.mxu0 %v4111_v56  ;;  %3535 = vmatpush3.bf16.msra.mxu1 %v4112_v57  ;;  %v4175_v56 = vld [vmem:[%s5441_s3 + $0x38] sm:$0xff]  }
 0x120   :  { %3542 = vmatprep.subr.bf16.mxu0 %v4113_v58  ;;  %3564 = vmatprep.subr.bf16.mxu1 %v4114_v59  ;;  %v4176_v57 = vld [vmem:[%s5441_s3 + $0xb8] sm:$0xff]   ;;  %v4205_v58 = vmov 0.0   ;;  %v413_v59 = vlaneseq }
 0x122   :  { %2491 = vmatmul.mubr.bf16.vlgmr.msra.gmra.mrb[4].mxu0 %v4450_v5  ;;  %2531 = vmatmul.mubr.bf16.vlgmr.msra.gmra.mrb[4].mxu1 %v4656_v9  ;;  %v4122_v5 = vld [vmem:[%s5439_s1 + $0x920] ss:$20 sps:$4 sm:$0xff]  }
 0x123   :  { %3543 = vmatpush3.bf16.msra.mxu0 %v4115_v60  ;;  %3565 = vmatpush3.bf16.msra.mxu1 %v4116_v61  ;;  %v4123_v9 = vld [vmem:[%s5439_s1 + $0x560] ss:$20 sps:$4 sm:$0xff]   ;;  %v5369_v60 = vshrl.u32 %v413_v59, 7 }
 0x124   :  { %3544 = vmatprep.subr.bf16.mxu0 %v4117_v62  ;;  %3566 = vmatprep.subr.bf16.mxu1 %v4118_v63  ;;  %v5376_v63 = vld [vmem:[%s5442_s2] sm:$0x1f] }
 0x125   :  { %2570 = vmatprep.mubr.bf16.mxu0 %v4677_v15  ;;  %2610 = vmatprep.mubr.bf16.mxu1 %v4889_v24  ;;  %v4126_v15 = vld [vmem:[%s5439_s1 + $0x948] ss:$20 sps:$4 sm:$0xff]   ;;  %v415_v61 = vsub.s32 0, %v5369_v60  ;;  %v423_v62 = vsub.s32 2, %v5369_v60 }
 0x126   :  { %v4127_v24 = vld [vmem:[%s5439_s1 + $0x588] ss:$20 sps:$4 sm:$0xff]  }
 0x127   :  { %3545 = vmatpush3.bf16.msra.mxu0 %v4119_v0  ;;  %3567 = vmatpush3.bf16.msra.mxu1 %v4120_v1  ;;  %v419_v0 = vsub.s32 1, %v5369_v60  ;;  %v427_v1 = vsub.s32 3, %v5369_v60 }
 0x128   :  { %3546 = vmatprep.subr.bf16.mxu0 %v4121_v2  ;;  %3568 = vmatprep.subr.bf16.mxu1 %v4122_v5  ;;  %v416_v2 = vrot.slane %v5376_v63, %v415_v61  ;;  %v424_v5 = vrot.slane %v5376_v63, %v423_v62 }
 0x12b   :  { %3547 = vmatpush3.bf16.msra.mxu0 %v4123_v9  ;;  %3569 = vmatpush3.bf16.msra.mxu1 %v4124_v3  ;;  %v420_v9 = vrot.slane %v5376_v63, %v419_v0  ;;  %v428_v3 = vrot.slane %v5376_v63, %v427_v1  ;;  %v4184_v0 = vld [vmem:[%s5441_s3 + $0x138] sm:$0xff]  }
 0x12c   :  { %3548 = vmatprep.subr.bf16.mxu0 %v4125_v4  ;;  %3570 = vmatprep.subr.bf16.mxu1 %v4126_v15 }
 0x12f   :  { %3549 = vmatpush3.bf16.msra.mxu0 %v4127_v24  ;;  %3571 = vmatpush3.bf16.msra.mxu1 %v4128_v6 }
 0x130   :  { %3550 = vmatprep.subr.bf16.mxu0 %v4129_v7  ;;  %3572 = vmatprep.subr.bf16.mxu1 %v4130_v8 }
 0x133   :  { %3551 = vmatpush3.bf16.msra.mxu0 %v4131_v10  ;;  %3573 = vmatpush3.bf16.msra.mxu1 %v4132_v11 }
 0x134   :  { %3552 = vmatprep.subr.bf16.mxu0 %v4133_v12  ;;  %3574 = vmatprep.subr.bf16.mxu1 %v4134_v14 }
 0x137   :  { %3553 = vmatpush3.bf16.msra.mxu0 %v4135_v16  ;;  %3575 = vmatpush3.bf16.msra.mxu1 %v4136_v17 }
 0x138   :  { %3554 = vmatprep.subr.bf16.mxu0 %v4137_v18  ;;  %3576 = vmatprep.subr.bf16.mxu1 %v4138_v19 }
 0x13b   :  { %3555 = vmatpush3.bf16.msra.mxu0 %v4139_v22  ;;  %3577 = vmatpush3.bf16.msra.mxu1 %v4140_v23 }
 0x13c   :  { %3556 = vmatprep.subr.bf16.mxu0 %v4141_v13  ;;  %3578 = vmatprep.subr.bf16.mxu1 %v4142_v25 }
 0x13f   :  { %3557 = vmatpush3.bf16.msra.mxu0 %v4143_v26  ;;  %3579 = vmatpush3.bf16.msra.mxu1 %v4144_v27  ;;  %v4177_v26 = vld [vmem:[%s5441_s3 + $0x100] sm:$0xff]  }
 0x140   :  { %3586 = vmatprep.subr.bf16.mxu0 %v4145_v28  ;;  %3608 = vmatprep.subr.bf16.mxu1 %v4146_v31 }
 0x142   :  { %2571 = vmatmul.mubr.bf16.vlgmr.msra.gmra.mrb[8].mxu0 %v4871_v20  ;;  %2611 = vmatmul.mubr.bf16.vlgmr.msra.gmra.mrb[8].mxu1 %v5077_v29  ;;  %v4154_v20 = vld [vmem:[%s5441_s3 + $0xd0] sm:$0xff]  }
 0x143   :  { %3587 = vmatpush3.bf16.msra.mxu0 %v4147_v32  ;;  %3609 = vmatpush3.bf16.msra.mxu1 %v4148_v33  ;;  %v4155_v29 = vld [vmem:[%s5441_s3 + $0x10] sm:$0xff]  }
 0x144   :  { %3588 = vmatprep.subr.bf16.mxu0 %v4149_v21  ;;  %3610 = vmatprep.subr.bf16.mxu1 %v4150_v34 }
 0x147   :  { %3589 = vmatpush3.bf16.msra.mxu0 %v4151_v35  ;;  %3611 = vmatpush3.bf16.msra.mxu1 %v4152_v36 }
 0x148   :  { %3590 = vmatprep.subr.bf16.mxu0 %v4153_v37  ;;  %3612 = vmatprep.subr.bf16.mxu1 %v4154_v20  ;;  %v4178_v20 = vld [vmem:[%s5441_s3 + $0x108] sm:$0xff]  }
 0x14b   :  { %3591 = vmatpush3.bf16.msra.mxu0 %v4155_v29  ;;  %3613 = vmatpush3.bf16.msra.mxu1 %v4156_v38 }
 0x14c   :  { %3592 = vmatprep.subr.bf16.mxu0 %v4157_v39  ;;  %3614 = vmatprep.subr.bf16.mxu1 %v4158_v40 }
 0x14f   :  { %3593 = vmatpush3.bf16.msra.mxu0 %v4159_v41  ;;  %3615 = vmatpush3.bf16.msra.mxu1 %v4160_v48 }
 0x150   :  { %3594 = vmatprep.subr.bf16.mxu0 %v4161_v30  ;;  %3616 = vmatprep.subr.bf16.mxu1 %v4162_v42 }
 0x153   :  { %3595 = vmatpush3.bf16.msra.mxu0 %v4163_v43  ;;  %3617 = vmatpush3.bf16.msra.mxu1 %v4164_v44  ;;  %v4179_v43 = vld [vmem:[%s5441_s3 + $0x110] sm:$0xff]   ;;  %v4180_v44 = vld [vmem:[%s5441_s3 + $0x118] sm:$0xff]  }
 0x154   :  { %3596 = vmatprep.subr.bf16.mxu0 %v4165_v45  ;;  %3618 = vmatprep.subr.bf16.mxu1 %v4166_v46  ;;  %v4181_v45 = vld [vmem:[%s5441_s3 + $0x120] sm:$0xff]  }
 0x157   :  { %3597 = vmatpush3.bf16.msra.mxu0 %v4167_v47  ;;  %3619 = vmatpush3.bf16.msra.mxu1 %v4168_v49 }
 0x158   :  { %3598 = vmatprep.subr.bf16.mxu0 %v4169_v50  ;;  %3620 = vmatprep.subr.bf16.mxu1 %v4170_v51  ;;  %v4182_v50 = vld [vmem:[%s5441_s3 + $0x128] sm:$0xff]  }
 0x15b   :  { %3599 = vmatpush3.bf16.msra.mxu0 %v4171_v52  ;;  %3621 = vmatpush3.bf16.msra.mxu1 %v4172_v53 }
 0x15c   :  { %3600 = vmatprep.subr.bf16.mxu0 %v4173_v54  ;;  %3622 = vmatprep.subr.bf16.mxu1 %v4174_v55 }
 0x15f   :  { %3601 = vmatpush3.bf16.msra.mxu0 %v4175_v56  ;;  %3623 = vmatpush3.bf16.msra.mxu1 %v4176_v57  ;;  %v431_v56 = vsub.s32 4, %v5369_v60  ;;  %v4183_v57 = vld [vmem:[%s5441_s3 + $0x130] sm:$0xff]  }
 0x160   :  { %3639 = vmatprep.subr.bf16.mxu0 %v4205_v58 }
 0x161   :  { %v432_v62 = vrot.slane %v5376_v63, %v431_v56 }
 0x1d5   :  { %v2287_v4 = vpop.f32.mrb[0].mxu0  ;;  %v2451_v15 = vpop.f32.mrb[0].mxu1 }
 0x1d6   :  { %v3659_v24 = vadd.f32 %v2287_v4, %v416_v2  ;;  %v3661_v6 = vadd.f32 %v2451_v15, %v424_v5  ;;  %v2289_v7 = vpop.f32.mrb[1].mxu0  ;;  %v2453_v8 = vpop.f32.mrb[1].mxu1 }
 0x1d7   :  { %v3660_v10 = vadd.f32 %v2289_v7, %v420_v9  ;;  %v3662_v11 = vadd.f32 %v2453_v8, %v428_v3  ;;  %v2291_v12 = vpop.f32.mrb[2].mxu0  ;;  %v2455_v14 = vpop.f32.mrb[2].mxu1 }
 0x1d8   :  { %v3071_v16 = vmul.f32 0.9, %v3659_v24  ;;  %v3073_v17 = vmul.f32 0.9, %v3661_v6  ;;  %v2292_v18 = vpop.f32.mrb[3].mxu0  ;;  %v2456_v19 = vpop.f32.mrb[3].mxu1  ;;  %v2618_v27 = vpack.c.bf16 %v3659_v24, %v3659_v24  ;;  %v2620_v31 = vpack.c.bf16 %v3661_v6, %v3661_v6 }
 0x1d9   :  { %v2619_v22 = vpack.c.bf16 %v3660_v10, %v3660_v10  ;;  %v3072_v23 = vmul.f32 0.9, %v3660_v10  ;;  %v2621_v13 = vpack.c.bf16 %v3662_v11, %v3662_v11  ;;  %v3074_v25 = vmul.f32 0.9, %v3662_v11 }
 0x1da   :  { %v3076_v28 = vadd.f32 0.05, %v3071_v16  ;;  %v3078_v32 = vadd.f32 0.05, %v3073_v17 }
 0x1db   :  { %v3077_v33 = vadd.f32 0.05, %v3072_v23  ;;  %v3079_v21 = vadd.f32 0.05, %v3074_v25  ;;  %2982 = vmatprep.mubr.bf16.mxu0 %v2619_v22  ;;  %3022 = vmatprep.mubr.bf16.mxu1 %v2621_v13 }
 0x1dc   :  { %v3081_v34 = vmax.f32 %v3076_v28, 1e-06  ;;  %v3083_v35 = vmax.f32 %v3078_v32, 1e-06  ;;  %2983 = vmatmul.mubr.bf16.vlgmr.msra.gmra.mrb[12].mxu0 %v2618_v27  ;;  %3023 = vmatmul.mubr.bf16.vlgmr.msra.gmra.mrb[12].mxu1 %v2620_v31 }
 0x1dd   :  { %v3082_v36 = vmax.f32 %v3077_v33, 1e-06  ;;  %v3084_v37 = vmax.f32 %v3079_v21, 1e-06  ;;  %3640 = vmatpush3.bf16.msra.mxu0 %v4177_v26  ;;  %3655 = vmatprep.mubr.msk.bf16.mxu0 %vm4206_vm0, %v4205_v58 }
 0x1de   :  { %v3086_v29 = vmin.f32 %v3081_v34, 0.999999  ;;  %v3088_v38 = vmin.f32 %v3083_v35, 0.999999  ;;  %3641 = vmatprep.subr.bf16.mxu0 %v4205_v58 }
 0x1df   :  { %v3087_v39 = vmin.f32 %v3082_v36, 0.999999  ;;  %v3089_v40 = vmin.f32 %v3084_v37, 0.999999 }
 0x1e0   :  { %v3091_v41 = vsub.f32 1.0, %v3086_v29  ;;  %v3093_v48 = vsub.f32 1.0, %v3088_v38 }
 0x1e1   :  { %v3092_v30 = vsub.f32 1.0, %v3087_v39  ;;  %v3094_v42 = vsub.f32 1.0, %v3089_v40  ;;  %3642 = vmatpush3.bf16.msra.mxu0 %v4178_v20 }
 0x1e2   :  { %4185 = vrcp.f32 %v3091_v41  ;;  %3643 = vmatprep.subr.bf16.mxu0 %v4205_v58  ;;  %v3457_v41 = vld [vmem:[%s5444_s4] ss:$0 sm:$0xff] }
 0x1e3   :  { %4187 = vrcp.f32 %v3093_v48 }
 0x1e4   :  { %4189 = vrcp.f32 %v3092_v30 }
 0x1e5   :  { %4191 = vrcp.f32 %v3094_v42  ;;  %3644 = vmatpush3.bf16.msra.mxu0 %v4179_v43 }
 0x1e6   :  { %3645 = vmatprep.subr.bf16.mxu0 %v4205_v58 }
 0x1e9   :  { %3646 = vmatpush3.bf16.msra.mxu0 %v4180_v44 }
 0x1ea   :  { %3647 = vmatprep.subr.bf16.mxu0 %v4205_v58 }
 0x1ec   :  { %v4186_v46 = vpop.eup %4185 }
 0x1ed   :  { %v4188_v47 = vpop.eup %4187  ;;  %v3101_v49 = vmul.f32 %v4186_v46, %v3086_v29  ;;  %3648 = vmatpush3.bf16.msra.mxu0 %v4181_v45 }
 0x1ee   :  { %v4190_v51 = vpop.eup %4189  ;;  %v3103_v52 = vmul.f32 %v4188_v47, %v3088_v38  ;;  %3649 = vmatprep.subr.bf16.mxu0 %v4205_v58 }
 0x1ef   :  { %v4192_v53 = vpop.eup %4191  ;;  %4193 = vlog2.f32 %v3101_v49  ;;  %v3102_v54 = vmul.f32 %v4190_v51, %v3087_v39 }
 0x1f0   :  { %4195 = vlog2.f32 %v3103_v52  ;;  %v3104_v55 = vmul.f32 %v4192_v53, %v3089_v40 }
 0x1f1   :  { %4197 = vlog2.f32 %v3102_v54  ;;  %3650 = vmatpush3.bf16.msra.mxu0 %v4182_v50 }
 0x1f2   :  { %4199 = vlog2.f32 %v3104_v55  ;;  %3651 = vmatprep.subr.bf16.mxu0 %v4205_v58 }
 0x1f5   :  { %v3514_v59 = vpop.f32.mrb[4].mxu0  ;;  %v3536_v61 = vpop.f32.mrb[4].mxu1  ;;  %3652 = vmatpush3.bf16.msra.mxu0 %v4183_v57 }
 0x1f6   :  { %v3515_v1 = vpop.f32.mrb[5].mxu0  ;;  %v3537_v2 = vpop.f32.mrb[5].mxu1  ;;  %3653 = vmatprep.subr.bf16.mxu0 %v4205_v58 }
 0x1f7   :  { %v3516_v60 = vadd.f32 %v3515_v1, %v3514_v59  ;;  %v3538_v5 = vadd.f32 %v3537_v2, %v3536_v61  ;;  %v3517_v9 = vpop.f32.mrb[6].mxu0  ;;  %v3539_v3 = vpop.f32.mrb[6].mxu1 }
 0x1f8   :  { %v3518_v4 = vpop.f32.mrb[7].mxu0  ;;  %v3540_v15 = vpop.f32.mrb[7].mxu1 }
 0x1f9   :  { %v4194_v24 = vpop.eup %4193  ;;  %v2493_v6 = vadd.f32 %v3516_v60, %v432_v62  ;;  %3654 = vmatpush3.bf16.msra.mxu0 %v4184_v0 }
 0x1fa   :  { %v4196_v7 = vpop.eup %4195  ;;  %v3107_v63 = vmul.f32 0.6931472, %v4194_v24 }
 0x1fb   :  { %v4198_v8 = vpop.eup %4197  ;;  %v3111_v10 = vmul.f32 0.6931472, %v4196_v7  ;;  %v2533_v11 = vadd.f32 %v3538_v5, %v2493_v6 }
 0x1fc   :  { %v4200_v12 = vpop.eup %4199  ;;  %3116 = vst [vmem:[%s5443_s5] sm:$0xff] %v3107_v63  ;;  %v3109_v58 = vmul.f32 0.6931472, %v4198_v8 }
 0x1fd   :  { %3118 = vst [vmem:[%s5443_s5 + $0x10] sm:$0xff] %v3111_v10  ;;  %v3113_v14 = vmul.f32 0.6931472, %v4200_v12 }
 0x1fe   :  { %3117 = vst [vmem:[%s5443_s5 + $0x8] sm:$0xff] %v3109_v58 }
 0x1ff   :  { %3119 = vst [vmem:[%s5443_s5 + $0x18] sm:$0xff] %v3113_v14 }
 0x215   :  { %v3558_v16 = vpop.f32.mrb[8].mxu0  ;;  %v3580_v17 = vpop.f32.mrb[8].mxu1 }
 0x216   :  { %v3559_v18 = vpop.f32.mrb[9].mxu0  ;;  %v3581_v19 = vpop.f32.mrb[9].mxu1 }
 0x217   :  { %v3560_v22 = vadd.f32 %v3559_v18, %v3558_v16  ;;  %v3582_v23 = vadd.f32 %v3581_v19, %v3580_v17  ;;  %v3561_v13 = vpop.f32.mrb[10].mxu0  ;;  %v3583_v25 = vpop.f32.mrb[10].mxu1 }
 0x218   :  { %v3562_v26 = vpop.f32.mrb[11].mxu0  ;;  %v3584_v27 = vpop.f32.mrb[11].mxu1 }
 0x219   :  { %v2573_v28 = vadd.f32 %v3560_v22, %v2533_v11 }
 0x21b   :  { %v2613_v31 = vadd.f32 %v3582_v23, %v2573_v28 }
 0x21d   :  { %v2622_v32 = vpack.c.bf16 %v2613_v31, %v2613_v31  ;;  %v3075_v33 = vmul.f32 0.9, %v2613_v31 }
 0x21f   :  { %v3080_v21 = vadd.f32 0.05, %v3075_v33  ;;  %3656 = vmatmul.mubr.bf16.vlgmr.msra.gmra.mrb[16].mxu0 %v2622_v32 }
 0x221   :  { %v3085_v34 = vmax.f32 %v3080_v21, 1e-06 }
 0x223   :  { %v3090_v35 = vmin.f32 %v3085_v34, 0.999999 }
 0x225   :  { %v3095_v36 = vsub.f32 1.0, %v3090_v35 }
 0x227   :  { %4201 = vrcp.f32 %v3095_v36 }
 0x231   :  { %v4202_v37 = vpop.eup %4201 }
 0x232   :  { %v3105_v20 = vmul.f32 %v4202_v37, %v3090_v35 }
 0x234   :  { %4203 = vlog2.f32 %v3105_v20 }
 0x23e   :  { %v4204_v29 = vpop.eup %4203 }
 0x23f   :  { %v3115_v38 = vmul.f32 0.6931472, %v4204_v29 }
 0x241   :  { %3120 = vst [vmem:[%s5443_s5 + $0x20] sm:$0xff] %v3115_v38 }
 0x2af   :  { %v3602_v39 = vpop.f32.mrb[12].mxu0  ;;  %v3624_v40 = vpop.f32.mrb[12].mxu1 }
 0x2b0   :  { %v3603_v48 = vpop.f32.mrb[13].mxu0  ;;  %v3625_v30 = vpop.f32.mrb[13].mxu1 }
 0x2b1   :  { %v3604_v42 = vadd.f32 %v3603_v48, %v3602_v39  ;;  %v3626_v43 = vadd.f32 %v3625_v30, %v3624_v40  ;;  %v3605_v44 = vpop.f32.mrb[14].mxu0  ;;  %v3627_v45 = vpop.f32.mrb[14].mxu1 }
 0x2b2   :  { %v3606_v46 = vpop.f32.mrb[15].mxu0  ;;  %v3628_v47 = vpop.f32.mrb[15].mxu1 }
 0x2b3   :  { %v2985_v49 = vadd.f32 %v3604_v42, %v3457_v41 }
 0x2b5   :  { %v3025_v50 = vadd.f32 %v3626_v43, %v2985_v49 }
 0x2f2   :  { %v3064_v51 = vpop.f32.mrb[16].mxu0 }
 0x2f3   :  { %v3065_v52 = vadd.f32 %v3064_v51, %v3025_v50  ;;  %v3657_v53 = vpop.f32.mrb[17].mxu0 }
 0x2f4   :  { %v3067_v54 = vpop.f32.mrb[18].mxu0 }
 0x2f5   :  { %3070 = vst [vmem:[%s5445_s6] sm:$0xff] %v3065_v52  ;;  %v3658_v55 = vpop.f32.mrb[19].mxu0 }

</bundles_post_ra>
